<compile_context>
chip_gen: v5e
topology: v5e:2x2
jax: 0.10.0
libtpu: 0.0.40
codegen_flags: <defaults>
</compile_context>

<pallas_src>
import functools

import jax
import jax.numpy as jnp
from jax.experimental import pallas as pl
from jax.experimental.pallas import tpu as pltpu

_LANE = 128
_SUBLANE = 8


def _round_up(n, m):
    return ((n + m - 1) // m) * m


def _cdiv(a, b):
    return (a + b - 1) // b


def _mlp_fused_kernel(*refs, num_layers, compute_dtype):
    # refs = (x_ref, w0, b0, w1, b1, ..., w_{L-1}, b_{L-1}, o_ref)
    x_ref = refs[0]
    o_ref = refs[-1]
    wb = refs[1:-1]

    h = x_ref[...]  # (TB, in_dim); layer-0 operand stays in x's dtype (f32)
    for i in range(num_layers):
        w = wb[2 * i][...]        # (K_i, N_i): f32 for layer 0, compute_dtype after
        b = wb[2 * i + 1][...]    # (1, N_i), f32 (pre-padded in prepare_params)
        y = jnp.dot(h, w, preferred_element_type=jnp.float32) + b
        if i < num_layers - 1:
            h = jnp.maximum(y, 0.0).astype(compute_dtype)
        else:
            h = y
    o_ref[...] = h.astype(o_ref.dtype)


def prepare_params(params, compute_dtype=jnp.bfloat16):
    """Pad / cast the MLP parameters ONCE (call at init, reuse every forward).

    params: list of (W, b) with W stored as (in_features, out_features)
            (transposed vs PyTorch nn.Linear.weight).
    Layer-0 weight is kept in f32 (cheap, better accuracy for raw / positionally
    encoded inputs); later weights are cast to compute_dtype. All biases stay f32.
    Feature dims of hidden/output layers are zero-padded to 128 lanes so every
    hidden matmul and the output store are lane-dense.
    """
    compute_dtype = jnp.dtype(compute_dtype)
    num_layers = len(params)
    dims = [params[0][0].shape[0]] + [w.shape[1] for (w, _) in params]
    # pdims[0] = raw input dim (x is never padded); hidden/output padded to 128.
    pdims = [dims[0]] + [_round_up(d, _LANE) for d in dims[1:]]

    flat = []
    for i, (w, b) in enumerate(params):
        w_dt = jnp.float32 if i == 0 else compute_dtype
        wp = jnp.zeros((pdims[i], pdims[i + 1]), w_dt)
        wp = wp.at[: dims[i], : dims[i + 1]].set(w.astype(w_dt))
        bp = jnp.zeros((1, pdims[i + 1]), jnp.float32)
        bp = bp.at[0, : dims[i + 1]].set(b.astype(jnp.float32))
        flat += [wp, bp]

    return {
        "flat": flat,
        "dims": dims,
        "pdims": pdims,
        "num_layers": num_layers,
        "compute_dtype": compute_dtype,
    }


def mlp_forward(x, prepared, *, batch_tile=512, out_dtype=None):
    """Fused MLP forward: one pallas_call over the (ragged) batch dimension."""
    B, in_dim = x.shape
    dims = prepared["dims"]
    pdims = prepared["pdims"]
    L = prepared["num_layers"]
    compute_dtype = prepared["compute_dtype"]
    assert in_dim == dims[0], "input feature dim mismatch with prepared params"

    if out_dtype is None:
        out_dtype = jnp.float32 if compute_dtype == jnp.float32 else compute_dtype
    out_dtype = jnp.dtype(out_dtype)

    # Batch tiling: multiple of 8 sublanes; grid = cdiv(B, tile) with a partial
    # last block (no row padding of x). Keep >= 2 grid steps when possible so
    # v7x's two TensorCores both get work on the "parallel" axis.
    batch_tile = max(_SUBLANE, _round_up(batch_tile, _SUBLANE))
    batch_tile = min(batch_tile, _round_up(B, _SUBLANE))
    n_steps = _cdiv(B, batch_tile)
    if n_steps == 1 and B > _SUBLANE:
        batch_tile = _round_up(_cdiv(B, 2), _SUBLANE)
        n_steps = _cdiv(B, batch_tile)

    in_specs = [pl.BlockSpec((batch_tile, in_dim), lambda i: (i, 0))]
    for li in range(L):
        # Weights/biases: full-array blocks with constant index_map -> loaded
        # once and VMEM-resident across all grid steps.
        in_specs.append(pl.BlockSpec((pdims[li], pdims[li + 1]), lambda i: (0, 0)))
        in_specs.append(pl.BlockSpec((1, pdims[li + 1]), lambda i: (0, 0)))
    out_specs = pl.BlockSpec((batch_tile, pdims[-1]), lambda i: (i, 0))

    csize = compute_dtype.itemsize
    flops = 2 * B * sum(pdims[i] * pdims[i + 1] for i in range(L))
    bytes_accessed = (
        B * in_dim * jnp.dtype(x.dtype).itemsize
        + pdims[0] * pdims[1] * 4
        + sum(pdims[i] * pdims[i + 1] * csize for i in range(1, L))
        + sum(pdims[i + 1] * 4 for i in range(L))
        + B * pdims[-1] * out_dtype.itemsize)

    kernel = functools.partial(
        _mlp_fused_kernel, num_layers=L, compute_dtype=compute_dtype)

    out = pl.pallas_call(
        kernel,
        out_shape=jax.ShapeDtypeStruct((B, pdims[-1]), out_dtype),
        grid_spec=pltpu.PrefetchScalarGridSpec(
            num_scalar_prefetch=0,
            grid=(n_steps,),
            in_specs=in_specs,
            out_specs=out_specs,
        ),
        compiler_params=pltpu.CompilerParams(
            dimension_semantics=("parallel",),
            vmem_limit_bytes=32 * 1024 * 1024,
        ),
        cost_estimate=pl.CostEstimate(
            flops=flops, transcendentals=0, bytes_accessed=int(bytes_accessed)),
    )(x, *prepared["flat"])

    # Rows are already exact (out_shape batch dim == B); only slice the padded
    # output columns. Consumers that accept the padded slab can skip this.
    return out[:, : dims[-1]]


def init_mlp_params(key, input_dim, hidden_dim, output_dim, num_layers):
    """Init matching nn.Linear default (uniform +/- 1/sqrt(fan_in)).

    Returns list of (W, b) with W stored as (in_features, out_features).
    """
    dims = [input_dim] + [hidden_dim] * (num_layers - 1) + [output_dim]
    params = []
    for i in range(num_layers):
        fan_in, fan_out = dims[i], dims[i + 1]
        key, kw, kb = jax.random.split(key, 3)
        bound = 1.0 / (fan_in ** 0.5)
        w = jax.random.uniform(kw, (fan_in, fan_out), jnp.float32, -bound, bound)
        b = jax.random.uniform(kb, (fan_out,), jnp.float32, -bound, bound)
        params.append((w, b))
    return params


def mlp_reference(x, params):
    h = x
    n = len(params)
    for idx, (w, b) in enumerate(params):
        h = h @ w + b
        if idx < n - 1:
            h = jnp.maximum(h, 0.0)
    return h


if __name__ == "__main__":
    # NeRF-like shapes: MLP(input_dim=8, hidden_dim=32, output_dim=4, num_layers=4)
    input_dim, hidden_dim, output_dim, num_layers = 8, 32, 4, 4
    batch = 1000  # intentionally ragged (not a multiple of the batch tile)

    key = jax.random.PRNGKey(0)
    key, kx = jax.random.split(key)
    x = jax.random.normal(kx, (batch, input_dim), jnp.float32)

    params = init_mlp_params(key, input_dim, hidden_dim, output_dim, num_layers)
    ref = mlp_reference(x, params)

    # f32 path (exact against the reference). prepare_params is called ONCE.
    prep_f32 = prepare_params(params, compute_dtype=jnp.float32)
    out_f32 = jax.block_until_ready(mlp_forward(x, prep_f32, batch_tile=512))
    assert out_f32.shape == (batch, output_dim)
    assert jnp.allclose(out_f32, ref, atol=1e-5, rtol=1e-5)

    # bf16 hidden-layer path (layer 0 + bias/ReLU/accum stay f32), bf16 output.
    prep_bf16 = prepare_params(params, compute_dtype=jnp.bfloat16)
    out_bf16 = jax.block_until_ready(mlp_forward(x, prep_bf16, batch_tile=512))
    assert out_bf16.shape == (batch, output_dim)
    assert jnp.allclose(out_bf16.astype(jnp.float32), ref, atol=5e-2, rtol=5e-2)

    print("KERNEL_OK")
</pallas_src>

<mosaic_0001>
module attributes {stable_mosaic.version = 11 : i64} {
  func.func @_mlp_fused_kernel(%arg0: i32, %arg1: memref<512x8xf32, #tpu.memory_space<vmem>>, %arg2: memref<8x128xf32, #tpu.memory_space<vmem>>, %arg3: memref<1x128xf32, #tpu.memory_space<vmem>>, %arg4: memref<128x128xf32, #tpu.memory_space<vmem>>, %arg5: memref<1x128xf32, #tpu.memory_space<vmem>>, %arg6: memref<128x128xf32, #tpu.memory_space<vmem>>, %arg7: memref<1x128xf32, #tpu.memory_space<vmem>>, %arg8: memref<128x128xf32, #tpu.memory_space<vmem>>, %arg9: memref<1x128xf32, #tpu.memory_space<vmem>>, %arg10: memref<512x128xf32, #tpu.memory_space<vmem>>) attributes {dimension_semantics = [#tpu.dimension_semantics<parallel>], iteration_bounds = array<i64: 2>, scalar_prefetch = 0 : i64, scratch_operands = 0 : i64, tpu.core_type = #tpu.core_type<tc>, window_params = [{transform_indices = @transform_0, window_bounds = array<i64: 512, 8>}, {pipeline_mode = #tpu.pipeline_mode<synchronous>, transform_indices = @transform_1, window_bounds = array<i64: 8, 128>}, {pipeline_mode = #tpu.pipeline_mode<synchronous>, transform_indices = @transform_2, window_bounds = array<i64: 1, 128>}, {pipeline_mode = #tpu.pipeline_mode<synchronous>, transform_indices = @transform_3, window_bounds = array<i64: 128, 128>}, {pipeline_mode = #tpu.pipeline_mode<synchronous>, transform_indices = @transform_4, window_bounds = array<i64: 1, 128>}, {pipeline_mode = #tpu.pipeline_mode<synchronous>, transform_indices = @transform_5, window_bounds = array<i64: 128, 128>}, {pipeline_mode = #tpu.pipeline_mode<synchronous>, transform_indices = @transform_6, window_bounds = array<i64: 1, 128>}, {pipeline_mode = #tpu.pipeline_mode<synchronous>, transform_indices = @transform_7, window_bounds = array<i64: 128, 128>}, {pipeline_mode = #tpu.pipeline_mode<synchronous>, transform_indices = @transform_8, window_bounds = array<i64: 1, 128>}, {transform_indices = @transform_9, window_bounds = array<i64: 512, 128>}]} {
    %c0 = arith.constant 0 : index
    %c0_0 = arith.constant 0 : index
    %0 = vector.load %arg1[%c0, %c0_0] : memref<512x8xf32, #tpu.memory_space<vmem>>, vector<512x8xf32>
    %c0_1 = arith.constant 0 : index
    %c0_2 = arith.constant 0 : index
    %1 = vector.load %arg2[%c0_1, %c0_2] : memref<8x128xf32, #tpu.memory_space<vmem>>, vector<8x128xf32>
    %c0_3 = arith.constant 0 : index
    %c0_4 = arith.constant 0 : index
    %2 = vector.load %arg3[%c0_3, %c0_4] : memref<1x128xf32, #tpu.memory_space<vmem>>, vector<1x128xf32>
    %cst = arith.constant dense<0.000000e+00> : vector<512x128xf32>
    %3 = tpu.matmul %0, %1, %cst {dimension_numbers = #tpu.dot_dimension_numbers<[1], [0], [0], [1], [0, 0, 1, 1], [], []>} : vector<512x8xf32>, vector<8x128xf32>, vector<512x128xf32> -> vector<512x128xf32>
    %4 = vector.broadcast %2 : vector<1x128xf32> to vector<512x128xf32>
    %5 = arith.addf %3, %4 : vector<512x128xf32>
    %cst_5 = arith.constant 0.000000e+00 : f32
    %6 = vector.broadcast %cst_5 : f32 to vector<512x128xf32>
    %7 = arith.maximumf %5, %6 : vector<512x128xf32>
    %c0_6 = arith.constant 0 : index
    %c0_7 = arith.constant 0 : index
    %8 = vector.load %arg4[%c0_6, %c0_7] : memref<128x128xf32, #tpu.memory_space<vmem>>, vector<128x128xf32>
    %c0_8 = arith.constant 0 : index
    %c0_9 = arith.constant 0 : index
    %9 = vector.load %arg5[%c0_8, %c0_9] : memref<1x128xf32, #tpu.memory_space<vmem>>, vector<1x128xf32>
    %cst_10 = arith.constant dense<0.000000e+00> : vector<512x128xf32>
    %10 = tpu.matmul %7, %8, %cst_10 {dimension_numbers = #tpu.dot_dimension_numbers<[1], [0], [0], [1], [0, 0, 1, 1], [], []>} : vector<512x128xf32>, vector<128x128xf32>, vector<512x128xf32> -> vector<512x128xf32>
    %11 = vector.broadcast %9 : vector<1x128xf32> to vector<512x128xf32>
    %12 = arith.addf %10, %11 : vector<512x128xf32>
    %cst_11 = arith.constant 0.000000e+00 : f32
    %13 = vector.broadcast %cst_11 : f32 to vector<512x128xf32>
    %14 = arith.maximumf %12, %13 : vector<512x128xf32>
    %c0_12 = arith.constant 0 : index
    %c0_13 = arith.constant 0 : index
    %15 = vector.load %arg6[%c0_12, %c0_13] : memref<128x128xf32, #tpu.memory_space<vmem>>, vector<128x128xf32>
    %c0_14 = arith.constant 0 : index
    %c0_15 = arith.constant 0 : index
    %16 = vector.load %arg7[%c0_14, %c0_15] : memref<1x128xf32, #tpu.memory_space<vmem>>, vector<1x128xf32>
    %cst_16 = arith.constant dense<0.000000e+00> : vector<512x128xf32>
    %17 = tpu.matmul %14, %15, %cst_16 {dimension_numbers = #tpu.dot_dimension_numbers<[1], [0], [0], [1], [0, 0, 1, 1], [], []>} : vector<512x128xf32>, vector<128x128xf32>, vector<512x128xf32> -> vector<512x128xf32>
    %18 = vector.broadcast %16 : vector<1x128xf32> to vector<512x128xf32>
    %19 = arith.addf %17, %18 : vector<512x128xf32>
    %cst_17 = arith.constant 0.000000e+00 : f32
    %20 = vector.broadcast %cst_17 : f32 to vector<512x128xf32>
    %21 = arith.maximumf %19, %20 : vector<512x128xf32>
    %c0_18 = arith.constant 0 : index
    %c0_19 = arith.constant 0 : index
    %22 = vector.load %arg8[%c0_18, %c0_19] : memref<128x128xf32, #tpu.memory_space<vmem>>, vector<128x128xf32>
    %c0_20 = arith.constant 0 : index
    %c0_21 = arith.constant 0 : index
    %23 = vector.load %arg9[%c0_20, %c0_21] : memref<1x128xf32, #tpu.memory_space<vmem>>, vector<1x128xf32>
    %cst_22 = arith.constant dense<0.000000e+00> : vector<512x128xf32>
    %24 = tpu.matmul %21, %22, %cst_22 {dimension_numbers = #tpu.dot_dimension_numbers<[1], [0], [0], [1], [0, 0, 1, 1], [], []>} : vector<512x128xf32>, vector<128x128xf32>, vector<512x128xf32> -> vector<512x128xf32>
    %25 = vector.broadcast %23 : vector<1x128xf32> to vector<512x128xf32>
    %26 = arith.addf %24, %25 : vector<512x128xf32>
    %c0_23 = arith.constant 0 : index
    %c0_24 = arith.constant 0 : index
    %27 = vector.load %arg10[%c0_23, %c0_24] : memref<512x128xf32, #tpu.memory_space<vmem>>, vector<512x128xf32>
    tpu.vector_store %arg10[%c0_23, %c0_24], %26 {strides = array<i32>} : memref<512x128xf32, #tpu.memory_space<vmem>>, vector<512x128xf32>,
    return
  }
  func.func @transform_0(%arg0: i32) -> (i32, i32) {
    %c0_i32 = arith.constant 0 : i32
    %c0_i32_0 = arith.constant 0 : i32
    return %arg0, %c0_i32 : i32, i32
  }
  func.func @transform_1(%arg0: i32) -> (i32, i32) {
    %c0_i32 = arith.constant 0 : i32
    %c0_i32_0 = arith.constant 0 : i32
    %c0_i32_1 = arith.constant 0 : i32
    return %c0_i32, %c0_i32_0 : i32, i32
  }
  func.func @transform_2(%arg0: i32) -> (i32, i32) {
    %c0_i32 = arith.constant 0 : i32
    %c0_i32_0 = arith.constant 0 : i32
    %c0_i32_1 = arith.constant 0 : i32
    return %c0_i32, %c0_i32_0 : i32, i32
  }
  func.func @transform_3(%arg0: i32) -> (i32, i32) {
    %c0_i32 = arith.constant 0 : i32
    %c0_i32_0 = arith.constant 0 : i32
    %c0_i32_1 = arith.constant 0 : i32
    return %c0_i32, %c0_i32_0 : i32, i32
  }
  func.func @transform_4(%arg0: i32) -> (i32, i32) {
    %c0_i32 = arith.constant 0 : i32
    %c0_i32_0 = arith.constant 0 : i32
    %c0_i32_1 = arith.constant 0 : i32
    return %c0_i32, %c0_i32_0 : i32, i32
  }
  func.func @transform_5(%arg0: i32) -> (i32, i32) {
    %c0_i32 = arith.constant 0 : i32
    %c0_i32_0 = arith.constant 0 : i32
    %c0_i32_1 = arith.constant 0 : i32
    return %c0_i32, %c0_i32_0 : i32, i32
  }
  func.func @transform_6(%arg0: i32) -> (i32, i32) {
    %c0_i32 = arith.constant 0 : i32
    %c0_i32_0 = arith.constant 0 : i32
    %c0_i32_1 = arith.constant 0 : i32
    return %c0_i32, %c0_i32_0 : i32, i32
  }
  func.func @transform_7(%arg0: i32) -> (i32, i32) {
    %c0_i32 = arith.constant 0 : i32
    %c0_i32_0 = arith.constant 0 : i32
    %c0_i32_1 = arith.constant 0 : i32
    return %c0_i32, %c0_i32_0 : i32, i32
  }
  func.func @transform_8(%arg0: i32) -> (i32, i32) {
    %c0_i32 = arith.constant 0 : i32
    %c0_i32_0 = arith.constant 0 : i32
    %c0_i32_1 = arith.constant 0 : i32
    return %c0_i32, %c0_i32_0 : i32, i32
  }
  func.func @transform_9(%arg0: i32) -> (i32, i32) {
    %c0_i32 = arith.constant 0 : i32
    %c0_i32_0 = arith.constant 0 : i32
    return %arg0, %c0_i32 : i32, i32
  }
}

</mosaic_0001>

<bundles_post_ra>
// kernel: tpu_custom_call.1
= control target key start
LH: loop header
LB: loop body
LE: loop exit
PB: predicated region body
PF: predicated region fallthrough
CT: control target
= control target key end

     0   :  { %s2991_s0 = inlined_call_operand.vmem [shape: f32[1000,8], index: 0, kind: input, shape index: {}]   ;;  %s2992_s1 = inlined_call_operand.vmem [shape: f32[8,128], index: 1, kind: input, shape index: {}]   ;;  %s2993_s2 = inlined_call_operand.vmem [shape: f32[1,128], index: 2, kind: input, shape index: {}]   ;;  %s2994_s3 = inlined_call_operand.vmem [shape: f32[128,128], index: 3, kind: input, shape index: {}]   ;;  %s2995_s4 = inlined_call_operand.vmem [shape: f32[1,128], index: 4, kind: input, shape index: {}]   ;;  %s2996_s5 = inlined_call_operand.vmem [shape: f32[128,128], index: 5, kind: input, shape index: {}]   ;;  %s2997_s6 = inlined_call_operand.vmem [shape: f32[1,128], index: 6, kind: input, shape index: {}]   ;;  %s2998_s7 = inlined_call_operand.vmem [shape: f32[128,128], index: 7, kind: input, shape index: {}]   ;;  %s2999_s8 = inlined_call_operand.vmem [shape: f32[1,128], index: 8, kind: input, shape index: {}]   ;;  %s3000_s9 = inlined_call_operand.hbm [shape: f32[1000,128], index: 9, kind: output, shape index: {}]  }
   0x1   :  { %3002 = sst [smem:[#allocation5_spill]] %s2991_s0 }
   0x2   :  { %3003 = sst [smem:[#allocation6_spill]] %s2992_s1 }
   0x3   :  { %14 = vsyncpa [#allocation3], 0 }
   0x4   :  { %16 = vsyncpa [#allocation3 + $0x1], 0  ;;  %s2128_s30 = smov 0   ;;  %s2130_s10 = smov 0  }
   0x5   :  { %s2132_s11 = smov 0   ;;  %s2134_s12 = smov 0  }
   0x6 LB: > { %s2149_s13 = sadd.s32 4294967295, %s2073_s12   ;;  %s1857_s14 = sadd.s32 4294967294, %s2073_s12   ;;  %s2073_s12 = sphi %s2134_s12, %s3013_s12   ;;  %s2069_s11 = sphi %s2132_s11, %s3012_s11   ;;  %s2065_s10 = sphi %s2130_s10, %s3011_s10   ;;  %s2061_s30 = sphi %s2128_s30, %s3010_s30  }
   0x7   : > { %s2153_s15 = sadd.s32 1, %s2073_s12   ;;  %s223_s16 = sadd.s32 1, %s2069_s11 }
   0x8   : > { %s220_s17 = ssub.s32 %s2073_s12, %s2153_s15  ;;  %p233_p0 = scmp.ne.s32.totalorder %s2069_s11, %s2065_s10 }
   0x9   : > { %p221_p1 = scmp.eq.s32.totalorder %s220_s17, 0  ;;  %p234_p2 = scmp.eq.s32.totalorder %s2149_s13, 1 }
   0xa   : > { %p239_p3 = scmp.ne.s32.totalorder %s2065_s10, %s2061_s30  ;;  %p240_p4 = scmp.eq.s32.totalorder %s1857_s14, 1 }
   0xb   : > { %s2164_s18 = scalar_select %p221_p1, %s2069_s11, %s223_s16  }
   0xc   : > { %p2166_p5 = por %p234_p2, %p233_p0  ;;  %p2170_p6 = por %p240_p4, %p239_p3 }
   0xd   : > { %p1860_p7 = scmp.ge.s32.totalorder %s2073_s12, 1  ;;  %p299_p8 = scmp.lt.s32.totalorder %s2073_s12, 3 }
   0xf   : > { %p300_p9 = pnand %p1860_p7, %p299_p8 }
  0x10   : > { %s3006_s1 = sld [smem:[#allocation6_spill]] (!%p300_p9)  ;;  %s2180_s23 = sshll.u32 (!%p300_p9), %s2149_s13, 6 }
  0x11   : > { %303 = sbr.rel (%p300_p9) target bundleno = 1476 (0x5c4), region = 56  ;;  %p344_p10 = scmp.lt.s32.totalorder (!%p300_p9), %s2180_s23, 124 }
  0x12   : > { %s3007_s0 = sld [smem:[#allocation5_spill]] (!%p300_p9)  ;;  %s336_s22 = sand.u32 (!%p300_p9), 1, %s2065_s10  }
  0x13   : > { %s1861_s24 = sshll.u32 (!%p300_p9), %s336_s22, 9 }
  0x16   : > { %v422_v0 = vld [vmem:[%s3006_s1] sm:$0xff]  ;;  %v908_v1 = vld [vmem:[%s2994_s3 + $0x78] sm:$0xff]  ;;  %s345_s26 = scalar_select %p344_p10, %s2180_s23, 124  ;;  %vm427_vm0 = vcmask 64512   ;;  %v907_v3 = vld [vmem:[%s2994_s3 + $0x70] sm:$0xff] }
  0x17   : > { %635 = vmatpush.msra.mxu0 %v422_v0  ;;  %1938 = vmatpush.msra.mxu1 %v908_v1  ;;  %v906_v8 = vld [vmem:[%s2994_s3 + $0x68] sm:$0xff]  ;;  %v905_v13 = vld [vmem:[%s2994_s3 + $0x60] sm:$0xff]  ;;  %v904_v16 = vld [vmem:[%s2994_s3 + $0x58] sm:$0xff]  ;;  %s1781_s21 = ssub.s32 (%p2166_p5), 125, %s2180_s23 }
  0x18   : > { %s1863_s27 = sshll.u32 %s345_s26, 3  ;;  %v903_v17 = vld [vmem:[%s2994_s3 + $0x50] sm:$0xff]  ;;  %v902_v18 = vld [vmem:[%s2994_s3 + $0x48] sm:$0xff]  ;;  %v901_v20 = vld [vmem:[%s2994_s3 + $0x40] sm:$0xff]  ;;  %p1782_p11 = scmp.lt.s32.totalorder (%p2166_p5), %s1781_s21, 64 }
  0x19   : > { %913 = vmatpush.msrb.mxu0 %v908_v1  ;;  %s2190_s14 = scalar_lea.vmem %s3007_s0, %s1863_s27  ;;  %1939 = vmatpush.msra.mxu1 %v907_v3  ;;  %v900_v21 = vld [vmem:[%s2994_s3 + $0x38] sm:$0xff]  ;;  %v899_v22 = vld [vmem:[%s2994_s3 + $0x30] sm:$0xff]  ;;  %v898_v24 = vld [vmem:[%s2994_s3 + $0x28] sm:$0xff]  ;;  %s2719_s27 = scalar_lea.vmem [#allocation2], %s1861_s24 }
  0x1a   : > { %v358_v2 = vld [vmem:[%s2190_s14] sm:$0xff]  ;;  %v359_v4 = vld [vmem:[%s2190_s14 + $0x8] sm:$0xff]  ;;  %v360_v5 = vld [vmem:[%s2190_s14 + $0x10] sm:$0xff] }
  0x1b   : > { %1864 = vmatmul.msk.f32.vlgmr.msra.gmra.mxu0 %vm427_vm0, %v358_v2  ;;  %v361_v6 = vld [vmem:[%s2190_s14 + $0x18] sm:$0xff]  ;;  %v362_v7 = vld [vmem:[%s2190_s14 + $0x20] sm:$0xff]  ;;  %1940 = vmatpush.msra.mxu1 %v906_v8  ;;  %v363_v9 = vld [vmem:[%s2190_s14 + $0x28] sm:$0xff] }
  0x1c   : > { %914 = vmatpush.msrb.mxu0 %v907_v3  ;;  %v364_v10 = vld [vmem:[%s2190_s14 + $0x30] sm:$0xff]  ;;  %v365_v11 = vld [vmem:[%s2190_s14 + $0x38] sm:$0xff]  ;;  %v366_v12 = vld [vmem:[%s2190_s14 + $0x40] sm:$0xff] }
  0x1d   : > { %1941 = vmatpush.msra.mxu1 %v905_v13  ;;  %v367_v14 = vld [vmem:[%s2190_s14 + $0x48] sm:$0xff]  ;;  %v368_v15 = vld [vmem:[%s2190_s14 + $0x50] sm:$0xff]  ;;  %v369_v19 = vld [vmem:[%s2190_s14 + $0x58] sm:$0xff] }
  0x1e   : > { %915 = vmatpush.msrb.mxu0 %v906_v8  ;;  %v370_v23 = vld [vmem:[%s2190_s14 + $0x60] sm:$0xff]  ;;  %v896_v26 = vld [vmem:[%s2994_s3 + $0x18] sm:$0xff]  ;;  %v895_v27 = vld [vmem:[%s2994_s3 + $0x10] sm:$0xff] }
  0x1f   : > { %1942 = vmatpush.msra.mxu1 %v904_v16  ;;  %v897_v25 = vld [vmem:[%s2994_s3 + $0x20] sm:$0xff]  ;;  %v371_v28 = vld [vmem:[%s2190_s14 + $0x68] sm:$0xff]  ;;  %v372_v31 = vld [vmem:[%s2190_s14 + $0x70] sm:$0xff] }
  0x20   : > { %916 = vmatpush.msrb.mxu0 %v905_v13  ;;  %v894_v29 = vld [vmem:[%s2994_s3 + $0x8] sm:$0xff]  ;;  %v893_v30 = vld [vmem:[%s2994_s3] sm:$0xff]  ;;  %v373_v32 = vld [vmem:[%s2190_s14 + $0x78] sm:$0xff] }
  0x21   : > { %1943 = vmatpush.msra.mxu1 %v903_v17  ;;  %v374_v34 = vld [vmem:[%s2190_s14 + $0x80] sm:$0xff]  ;;  %v375_v37 = vld [vmem:[%s2190_s14 + $0x88] sm:$0xff]  ;;  %v376_v41 = vld [vmem:[%s2190_s14 + $0x90] sm:$0xff] }
  0x22   : > { %917 = vmatpush.msrb.mxu0 %v904_v16  ;;  %v2276_v35 = vld [vmem:[%s2993_s2] ss:$0 sm:$0xff]  ;;  %v377_v45 = vld [vmem:[%s2190_s14 + $0x98] sm:$0xff]  ;;  %v379_v53 = vld [vmem:[%s2190_s14 + $0xa8] sm:$0xff] }
  0x23   : > { %1865 = vmatmul.msk.f32.gmra.mxu0 %vm427_vm0, %v359_v4  ;;  %1944 = vmatpush.msra.mxu1 %v902_v18  ;;  %v378_v49 = vld [vmem:[%s2190_s14 + $0xa0] sm:$0xff]  ;;  %v380_v57 = vld [vmem:[%s2190_s14 + $0xb0] sm:$0xff]  ;;  %v381_v61 = vld [vmem:[%s2190_s14 + $0xb8] sm:$0xff] }
  0x24   : > { %918 = vmatpush.msrb.mxu0 %v903_v17  ;;  %v382_v1 = vld [vmem:[%s2190_s14 + $0xc0] sm:$0xff]  ;;  %v385_v13 = vld [vmem:[%s2190_s14 + $0xd8] sm:$0xff] }
  0x25   : > { %1945 = vmatpush.msra.mxu1 %v901_v20  ;;  %v386_v17 = vld [vmem:[%s2190_s14 + $0xe0] sm:$0xff] }
  0x26   : > { %919 = vmatpush.msrb.mxu0 %v902_v18 }
  0x27   : > { %1946 = vmatpush.msra.mxu1 %v900_v21 }
  0x28   : > { %920 = vmatpush.msrb.mxu0 %v901_v20 }
  0x29   : > { %1947 = vmatpush.msra.mxu1 %v899_v22 }
  0x2a   : > { %921 = vmatpush.msrb.mxu0 %v900_v21  ;;  %v387_v21 = vld [vmem:[%s2190_s14 + $0xe8] sm:$0xff] }
  0x2b   : > { %1866 = vmatmul.msk.f32.gmra.mxu0 %vm427_vm0, %v360_v5  ;;  %1948 = vmatpush.msra.mxu1 %v898_v24  ;;  %v383_v5 = vld [vmem:[%s2190_s14 + $0xc8] sm:$0xff] }
  0x2c   : > { %922 = vmatpush.msrb.mxu0 %v899_v22 }
  0x2d   : > { %1949 = vmatpush.msra.mxu1 %v897_v25 }
  0x2e   : > { %923 = vmatpush.msrb.mxu0 %v898_v24 }
  0x2f   : > { %1950 = vmatpush.msra.mxu1 %v896_v26 }
  0x30   : > { %924 = vmatpush.msrb.mxu0 %v897_v25  ;;  %v388_v25 = vld [vmem:[%s2190_s14 + $0xf0] sm:$0xff] }
  0x31   : > { %1951 = vmatpush.msra.mxu1 %v895_v27 }
  0x32   : > { %925 = vmatpush.msrb.mxu0 %v896_v26 }
  0x33   : > { %1867 = vmatmul.msk.f32.gmra.mxu0 %vm427_vm0, %v361_v6  ;;  %1952 = vmatpush.msra.mxu1 %v894_v29 }
  0x34   : > { %926 = vmatpush.msrb.mxu0 %v895_v27 }
  0x35   : > { %1953 = vmatpush.msra.mxu1 %v893_v30 }
  0x36   : > { %927 = vmatpush.msrb.mxu0 %v894_v29  ;;  %v389_v29 = vld [vmem:[%s2190_s14 + $0xf8] sm:$0xff] }
  0x38   : > { %928 = vmatpush.msrb.mxu0 %v893_v30 }
  0x3b   : > { %1868 = vmatmul.msk.f32.gmra.mxu0 %vm427_vm0, %v362_v7 }
  0x43   : > { %1869 = vmatmul.msk.f32.gmra.mxu0 %vm427_vm0, %v363_v9  ;;  %v384_v9 = vld [vmem:[%s2190_s14 + $0xd0] sm:$0xff] }
  0x4b   : > { %1870 = vmatmul.msk.f32.gmra.mxu0 %vm427_vm0, %v364_v10 }
  0x53   : > { %1871 = vmatmul.msk.f32.gmra.mxu0 %vm427_vm0, %v365_v11 }
  0x5b   : > { %1872 = vmatmul.msk.f32.gmra.mxu0 %vm427_vm0, %v366_v12 }
  0x63   : > { %1873 = vmatmul.msk.f32.gmra.mxu0 %vm427_vm0, %v367_v14 }
  0x6b   : > { %1874 = vmatmul.msk.f32.gmra.mxu0 %vm427_vm0, %v368_v15 }
  0x73   : > { %1875 = vmatmul.msk.f32.gmra.mxu0 %vm427_vm0, %v369_v19 }
  0x7b   : > { %1876 = vmatmul.msk.f32.gmra.mxu0 %vm427_vm0, %v370_v23 }
  0x83   : > { %1877 = vmatmul.msk.f32.gmra.mxu0 %vm427_vm0, %v371_v28 }
  0x8b   : > { %1878 = vmatmul.msk.f32.gmra.mxu0 %vm427_vm0, %v372_v31 }
  0x93   : > { %1879 = vmatmul.msk.f32.gmra.mxu0 %vm427_vm0, %v373_v32 }
  0x98   : > { %v2269_v33 = vpop.f32.mrf.mxu0 }
  0x9b   : > { %1880 = vmatmul.msk.f32.gmra.mxu0 %vm427_vm0, %v374_v34  ;;  %v390_v34 = vld [vmem:[%s2190_s14 + $0x100] sm:$0xff] }
  0xa0   : > { %v640_v36 = vpop.f32.mrf.mxu0 }
  0xa1   : > { %v641_v38 = vadd.f32 %v2276_v35, %v640_v36 }
  0xa3   : > { %1881 = vmatmul.msk.f32.gmra.mxu0 %vm427_vm0, %v375_v37  ;;  %v830_v39 = vmax.f32 %v641_v38, 0.0 }
  0xa5   : > { %932 = vmatmul.f32.vlgmr.msra.gmra.mxu1 %v830_v39  ;;  %v391_v39 = vld [vmem:[%s2190_s14 + $0x108] sm:$0xff] }
  0xa8   : > { %v643_v40 = vpop.f32.mrf.mxu0 }
  0xa9   : > { %v644_v42 = vadd.f32 %v2276_v35, %v643_v40 }
  0xab   : > { %1882 = vmatmul.msk.f32.gmra.mxu0 %vm427_vm0, %v376_v41  ;;  %v831_v43 = vmax.f32 %v644_v42, 0.0 }
  0xad   : > { %935 = vmatmul.f32.gmra.mxu1 %v831_v43 }
  0xb0   : > { %v646_v44 = vpop.f32.mrf.mxu0 }
  0xb1   : > { %v647_v46 = vadd.f32 %v2276_v35, %v646_v44  ;;  %v392_v44 = vld [vmem:[%s2190_s14 + $0x110] sm:$0xff] }
  0xb3   : > { %1883 = vmatmul.msk.f32.gmra.mxu0 %vm427_vm0, %v377_v45  ;;  %v832_v47 = vmax.f32 %v647_v46, 0.0 }
  0xb5   : > { %938 = vmatmul.f32.gmra.mxu1 %v832_v47 }
  0xb8   : > { %v649_v48 = vpop.f32.mrf.mxu0 }
  0xb9   : > { %v650_v50 = vadd.f32 %v2276_v35, %v649_v48 }
  0xbb   : > { %1884 = vmatmul.msk.f32.gmra.mxu0 %vm427_vm0, %v378_v49  ;;  %v833_v51 = vmax.f32 %v650_v50, 0.0  ;;  %v393_v49 = vld [vmem:[%s2190_s14 + $0x118] sm:$0xff] }
  0xbd   : > { %941 = vmatmul.f32.gmra.mxu1 %v833_v51 }
  0xc0   : > { %v652_v52 = vpop.f32.mrf.mxu0 }
  0xc1   : > { %v653_v54 = vadd.f32 %v2276_v35, %v652_v52 }
  0xc3   : > { %1885 = vmatmul.msk.f32.gmra.mxu0 %vm427_vm0, %v379_v53  ;;  %v834_v55 = vmax.f32 %v653_v54, 0.0  ;;  %v394_v54 = vld [vmem:[%s2190_s14 + $0x120] sm:$0xff] }
  0xc5   : > { %944 = vmatmul.f32.gmra.mxu1 %v834_v55 }
  0xc8   : > { %v655_v56 = vpop.f32.mrf.mxu0 }
  0xc9   : > { %v656_v58 = vadd.f32 %v2276_v35, %v655_v56 }
  0xcb   : > { %1886 = vmatmul.msk.f32.gmra.mxu0 %vm427_vm0, %v380_v57  ;;  %v835_v59 = vmax.f32 %v656_v58, 0.0 }
  0xcd   : > { %947 = vmatmul.f32.gmra.mxu1 %v835_v59  ;;  %v395_v59 = vld [vmem:[%s2190_s14 + $0x128] sm:$0xff] }
  0xd0   : > { %v658_v60 = vpop.f32.mrf.mxu0 }
  0xd1   : > { %v659_v62 = vadd.f32 %v2276_v35, %v658_v60 }
  0xd3   : > { %1887 = vmatmul.msk.f32.gmra.mxu0 %vm427_vm0, %v381_v61  ;;  %v836_v63 = vmax.f32 %v659_v62, 0.0 }
  0xd5   : > { %950 = vmatmul.f32.gmra.mxu1 %v836_v63 }
  0xd8   : > { %v661_v0 = vpop.f32.mrf.mxu0 }
  0xd9   : > { %v662_v2 = vadd.f32 %v2276_v35, %v661_v0  ;;  %v396_v0 = vld [vmem:[%s2190_s14 + $0x130] sm:$0xff] }
  0xdb   : > { %1888 = vmatmul.msk.f32.gmra.mxu0 %vm427_vm0, %v382_v1  ;;  %v837_v3 = vmax.f32 %v662_v2, 0.0 }
  0xdd   : > { %953 = vmatmul.f32.gmra.mxu1 %v837_v3 }
  0xe0   : > { %v664_v4 = vpop.f32.mrf.mxu0 }
  0xe1   : > { %v665_v6 = vadd.f32 %v2276_v35, %v664_v4 }
  0xe3   : > { %1889 = vmatmul.msk.f32.gmra.mxu0 %vm427_vm0, %v383_v5  ;;  %v838_v7 = vmax.f32 %v665_v6, 0.0  ;;  %v397_v5 = vld [vmem:[%s2190_s14 + $0x138] sm:$0xff] }
  0xe5   : > { %956 = vmatmul.f32.gmra.mxu1 %v838_v7 }
  0xe8   : > { %v667_v8 = vpop.f32.mrf.mxu0 }
  0xe9   : > { %v668_v10 = vadd.f32 %v2276_v35, %v667_v8 }
  0xeb   : > { %1890 = vmatmul.msk.f32.gmra.mxu0 %vm427_vm0, %v384_v9  ;;  %v839_v11 = vmax.f32 %v668_v10, 0.0  ;;  %v398_v10 = vld [vmem:[%s2190_s14 + $0x140] sm:$0xff] }
  0xed   : > { %959 = vmatmul.f32.gmra.mxu1 %v839_v11 }
  0xf0   : > { %v670_v12 = vpop.f32.mrf.mxu0 }
  0xf1   : > { %v671_v14 = vadd.f32 %v2276_v35, %v670_v12 }
  0xf3   : > { %1891 = vmatmul.msk.f32.gmra.mxu0 %vm427_vm0, %v385_v13  ;;  %v840_v15 = vmax.f32 %v671_v14, 0.0 }
  0xf5   : > { %962 = vmatmul.f32.gmra.mxu1 %v840_v15  ;;  %v399_v15 = vld [vmem:[%s2190_s14 + $0x148] sm:$0xff] }
  0xf8   : > { %v673_v16 = vpop.f32.mrf.mxu0 }
  0xf9   : > { %v674_v18 = vadd.f32 %v2276_v35, %v673_v16 }
  0xfb   : > { %1892 = vmatmul.msk.f32.gmra.mxu0 %vm427_vm0, %v386_v17  ;;  %v841_v19 = vmax.f32 %v674_v18, 0.0 }
  0xfd   : > { %965 = vmatmul.f32.gmra.mxu1 %v841_v19  ;;  %v400_v19 = vld [vmem:[%s2190_s14 + $0x150] sm:$0xff] }
 0x100   : > { %v676_v20 = vpop.f32.mrf.mxu0 }
 0x101   : > { %v677_v22 = vadd.f32 %v2276_v35, %v676_v20 }
 0x103   : > { %1893 = vmatmul.msk.f32.gmra.mxu0 %vm427_vm0, %v387_v21  ;;  %v842_v23 = vmax.f32 %v677_v22, 0.0 }
 0x105   : > { %968 = vmatmul.f32.gmra.mxu1 %v842_v23 }
 0x108   : > { %v679_v24 = vpop.f32.mrf.mxu0 }
 0x109   : > { %v680_v26 = vadd.f32 %v2276_v35, %v679_v24  ;;  %v401_v24 = vld [vmem:[%s2190_s14 + $0x158] sm:$0xff] }
 0x10b   : > { %1894 = vmatmul.msk.f32.gmra.mxu0 %vm427_vm0, %v388_v25  ;;  %v843_v27 = vmax.f32 %v680_v26, 0.0 }
 0x10d   : > { %971 = vmatmul.f32.gmra.mxu1 %v843_v27 }
 0x110   : > { %v682_v28 = vpop.f32.mrf.mxu0 }
 0x111   : > { %v683_v30 = vadd.f32 %v2276_v35, %v682_v28 }
 0x113   : > { %1895 = vmatmul.msk.f32.gmra.mxu0 %vm427_vm0, %v389_v29  ;;  %v844_v31 = vmax.f32 %v683_v30, 0.0  ;;  %v402_v29 = vld [vmem:[%s2190_s14 + $0x160] sm:$0xff] }
 0x115   : > { %974 = vmatmul.f32.gmra.mxu1 %v844_v31 }
 0x118   : > { %v685_v32 = vpop.f32.mrf.mxu0 }
 0x119   : > { %v686_v36 = vadd.f32 %v2276_v35, %v685_v32 }
 0x11b   : > { %1896 = vmatmul.msk.f32.gmra.mxu0 %vm427_vm0, %v390_v34  ;;  %v845_v37 = vmax.f32 %v686_v36, 0.0  ;;  %v403_v36 = vld [vmem:[%s2190_s14 + $0x168] sm:$0xff] }
 0x11d   : > { %977 = vmatmul.f32.gmra.mxu1 %v845_v37 }
 0x120   : > { %v688_v38 = vpop.f32.mrf.mxu0 }
 0x121   : > { %v689_v40 = vadd.f32 %v2276_v35, %v688_v38 }
 0x122   : > { %v2328_v41 = vpop.f32.mrf.mxu1 }
 0x123   : > { %1897 = vmatmul.msk.f32.gmra.mxu0 %vm427_vm0, %v391_v39  ;;  %v846_v42 = vmax.f32 %v689_v40, 0.0 }
 0x125   : > { %980 = vmatmul.f32.gmra.mxu1 %v846_v42  ;;  %v404_v42 = vld [vmem:[%s2190_s14 + $0x170] sm:$0xff] }
 0x128   : > { %v691_v43 = vpop.f32.mrf.mxu0 }
 0x129   : > { %v692_v45 = vadd.f32 %v2276_v35, %v691_v43 }
 0x12a   : > { %v2333_v46 = vpop.f32.mrf.mxu1 }
 0x12b   : > { %1898 = vmatmul.msk.f32.gmra.mxu0 %vm427_vm0, %v392_v44  ;;  %v847_v47 = vmax.f32 %v692_v45, 0.0 }
 0x12d   : > { %983 = vmatmul.f32.gmra.mxu1 %v847_v47  ;;  %v405_v47 = vld [vmem:[%s2190_s14 + $0x178] sm:$0xff] }
 0x130   : > { %v694_v48 = vpop.f32.mrf.mxu0 }
 0x131   : > { %v695_v50 = vadd.f32 %v2276_v35, %v694_v48 }
 0x132   : > { %v2338_v51 = vpop.f32.mrf.mxu1 }
 0x133   : > { %1899 = vmatmul.msk.f32.gmra.mxu0 %vm427_vm0, %v393_v49  ;;  %v848_v52 = vmax.f32 %v695_v50, 0.0 }
 0x135   : > { %986 = vmatmul.f32.gmra.mxu1 %v848_v52 }
 0x138   : > { %v697_v53 = vpop.f32.mrf.mxu0 }
 0x139   : > { %v698_v55 = vadd.f32 %v2276_v35, %v697_v53  ;;  %v406_v53 = vld [vmem:[%s2190_s14 + $0x180] sm:$0xff] }
 0x13a   : > { %v2343_v56 = vpop.f32.mrf.mxu1 }
 0x13b   : > { %1900 = vmatmul.msk.f32.gmra.mxu0 %vm427_vm0, %v394_v54  ;;  %v849_v57 = vmax.f32 %v698_v55, 0.0 }
 0x13d   : > { %989 = vmatmul.f32.gmra.mxu1 %v849_v57 }
 0x140   : > { %v700_v58 = vpop.f32.mrf.mxu0 }
 0x141   : > { %v701_v60 = vadd.f32 %v2276_v35, %v700_v58 }
 0x142   : > { %v2348_v61 = vpop.f32.mrf.mxu1 }
 0x143   : > { %1901 = vmatmul.msk.f32.gmra.mxu0 %vm427_vm0, %v395_v59  ;;  %v850_v62 = vmax.f32 %v701_v60, 0.0  ;;  %v407_v59 = vld [vmem:[%s2190_s14 + $0x188] sm:$0xff] }
 0x145   : > { %992 = vmatmul.f32.gmra.mxu1 %v850_v62 }
 0x148   : > { %v703_v63 = vpop.f32.mrf.mxu0 }
 0x149   : > { %v704_v1 = vadd.f32 %v2276_v35, %v703_v63 }
 0x14a   : > { %v2353_v2 = vpop.f32.mrf.mxu1 }
 0x14b   : > { %1902 = vmatmul.msk.f32.gmra.mxu0 %vm427_vm0, %v396_v0  ;;  %v851_v3 = vmax.f32 %v704_v1, 0.0  ;;  %v408_v1 = vld [vmem:[%s2190_s14 + $0x190] sm:$0xff] }
 0x14d   : > { %995 = vmatmul.f32.gmra.mxu1 %v851_v3 }
 0x150   : > { %v706_v4 = vpop.f32.mrf.mxu0 }
 0x151   : > { %v707_v6 = vadd.f32 %v2276_v35, %v706_v4 }
 0x152   : > { %v2359_v8 = vpop.f32.mrf.mxu1 }
 0x153   : > { %1903 = vmatmul.msk.f32.gmra.mxu0 %vm427_vm0, %v397_v5  ;;  %v852_v7 = vmax.f32 %v707_v6, 0.0 }
 0x155   : > { %998 = vmatmul.f32.gmra.mxu1 %v852_v7  ;;  %v409_v7 = vld [vmem:[%s2190_s14 + $0x198] sm:$0xff] }
 0x158   : > { %v709_v9 = vpop.f32.mrf.mxu0 }
 0x159   : > { %v710_v11 = vadd.f32 %v2276_v35, %v709_v9 }
 0x15a   : > { %v2364_v13 = vpop.f32.mrf.mxu1 }
 0x15b   : > { %1904 = vmatmul.msk.f32.gmra.mxu0 %vm427_vm0, %v398_v10  ;;  %v853_v12 = vmax.f32 %v710_v11, 0.0 }
 0x15d   : > { %1001 = vmatmul.f32.gmra.mxu1 %v853_v12  ;;  %v410_v12 = vld [vmem:[%s2190_s14 + $0x1a0] sm:$0xff] }
 0x160   : > { %v712_v14 = vpop.f32.mrf.mxu0 }
 0x161   : > { %v713_v16 = vadd.f32 %v2276_v35, %v712_v14 }
 0x162   : > { %v2370_v20 = vpop.f32.mrf.mxu1 }
 0x163   : > { %v854_v17 = vmax.f32 %v713_v16, 0.0  ;;  %1905 = vmatmul.msk.f32.gmra.mxu0 %vm427_vm0, %v399_v15 }
 0x165   : > { %1004 = vmatmul.f32.gmra.mxu1 %v854_v17 }
 0x168   : > { %v715_v18 = vpop.f32.mrf.mxu0 }
 0x169   : > { %v716_v21 = vadd.f32 %v2276_v35, %v715_v18  ;;  %v411_v18 = vld [vmem:[%s2190_s14 + $0x1a8] sm:$0xff] }
 0x16a   : > { %v2376_v26 = vpop.f32.mrf.mxu1 }
 0x16b   : > { %v855_v22 = vmax.f32 %v716_v21, 0.0  ;;  %1906 = vmatmul.msk.f32.gmra.mxu0 %vm427_vm0, %v400_v19 }
 0x16d   : > { %1007 = vmatmul.f32.gmra.mxu1 %v855_v22 }
 0x170   : > { %v718_v23 = vpop.f32.mrf.mxu0 }
 0x171   : > { %v719_v25 = vadd.f32 %v2276_v35, %v718_v23 }
 0x172   : > { %v2382_v32 = vpop.f32.mrf.mxu1 }
 0x173   : > { %v856_v27 = vmax.f32 %v719_v25, 0.0  ;;  %1907 = vmatmul.msk.f32.gmra.mxu0 %vm427_vm0, %v401_v24  ;;  %v412_v24 = vld [vmem:[%s2190_s14 + $0x1b0] sm:$0xff] }
 0x175   : > { %1010 = vmatmul.f32.gmra.mxu1 %v856_v27 }
 0x178   : > { %v721_v28 = vpop.f32.mrf.mxu0 }
 0x179   : > { %v722_v30 = vadd.f32 %v2276_v35, %v721_v28 }
 0x17a   : > { %v2387_v39 = vpop.f32.mrf.mxu1 }
 0x17b   : > { %v857_v31 = vmax.f32 %v722_v30, 0.0  ;;  %1908 = vmatmul.msk.f32.gmra.mxu0 %vm427_vm0, %v402_v29  ;;  %v413_v30 = vld [vmem:[%s2190_s14 + $0x1b8] sm:$0xff] }
 0x17d   : > { %1013 = vmatmul.f32.gmra.mxu1 %v857_v31 }
 0x180   : > { %v724_v34 = vpop.f32.mrf.mxu0 }
 0x181   : > { %v725_v37 = vadd.f32 %v2276_v35, %v724_v34 }
 0x182   : > { %v2393_v48 = vpop.f32.mrf.mxu1 }
 0x183   : > { %v858_v38 = vmax.f32 %v725_v37, 0.0  ;;  %1909 = vmatmul.msk.f32.gmra.mxu0 %vm427_vm0, %v403_v36 }
 0x185   : > { %1016 = vmatmul.f32.gmra.mxu1 %v858_v38  ;;  %v414_v38 = vld [vmem:[%s2190_s14 + $0x1c0] sm:$0xff] }
 0x188   : > { %v727_v40 = vpop.f32.mrf.mxu0 }
 0x189   : > { %v728_v43 = vadd.f32 %v2276_v35, %v727_v40 }
 0x18a   : > { %v2399_v55 = vpop.f32.mrf.mxu1 }
 0x18b   : > { %v859_v44 = vmax.f32 %v728_v43, 0.0  ;;  %1910 = vmatmul.msk.f32.gmra.mxu0 %vm427_vm0, %v404_v42 }
 0x18d   : > { %1019 = vmatmul.f32.gmra.mxu1 %v859_v44  ;;  %v415_v44 = vld [vmem:[%s2190_s14 + $0x1c8] sm:$0xff] }
 0x190   : > { %v730_v45 = vpop.f32.mrf.mxu0 }
 0x191   : > { %v731_v49 = vadd.f32 %v2276_v35, %v730_v45 }
 0x192   : > { %v2405_v63 = vpop.f32.mrf.mxu1 }
 0x193   : > { %v860_v50 = vmax.f32 %v731_v49, 0.0  ;;  %1911 = vmatmul.msk.f32.gmra.mxu0 %vm427_vm0, %v405_v47 }
 0x195   : > { %1022 = vmatmul.f32.gmra.mxu1 %v860_v50 }
 0x198   : > { %v733_v52 = vpop.f32.mrf.mxu0 }
 0x199   : > { %v734_v54 = vadd.f32 %v2276_v35, %v733_v52  ;;  %v416_v52 = vld [vmem:[%s2190_s14 + $0x1d0] sm:$0xff] }
 0x19a   : > { %v2410_v5 = vpop.f32.mrf.mxu1 }
 0x19b   : > { %v861_v57 = vmax.f32 %v734_v54, 0.0  ;;  %1912 = vmatmul.msk.f32.gmra.mxu0 %vm427_vm0, %v406_v53 }
 0x19d   : > { %1025 = vmatmul.f32.gmra.mxu1 %v861_v57 }
 0x1a0   : > { %v736_v58 = vpop.f32.mrf.mxu0 }
 0x1a1   : > { %v737_v60 = vadd.f32 %v2276_v35, %v736_v58 }
 0x1a2   : > { %v2416_v14 = vpop.f32.mrf.mxu1 }
 0x1a3   : > { %v862_v62 = vmax.f32 %v737_v60, 0.0  ;;  %1913 = vmatmul.msk.f32.gmra.mxu0 %vm427_vm0, %v407_v59  ;;  %v417_v59 = vld [vmem:[%s2190_s14 + $0x1d8] sm:$0xff] }
 0x1a5   : > { %1028 = vmatmul.f32.gmra.mxu1 %v862_v62 }
 0x1a8   : > { %v739_v0 = vpop.f32.mrf.mxu0 }
 0x1a9   : > { %v740_v3 = vadd.f32 %v2276_v35, %v739_v0 }
 0x1aa   : > { %v2422_v21 = vpop.f32.mrf.mxu1 }
 0x1ab   : > { %v863_v4 = vmax.f32 %v740_v3, 0.0  ;;  %1914 = vmatmul.msk.f32.gmra.mxu0 %vm427_vm0, %v408_v1  ;;  %v418_v3 = vld [vmem:[%s2190_s14 + $0x1e0] sm:$0xff] }
 0x1ad   : > { %1031 = vmatmul.f32.gmra.mxu1 %v863_v4 }
 0x1b0   : > { %v742_v6 = vpop.f32.mrf.mxu0 }
 0x1b1   : > { %v743_v9 = vadd.f32 %v2276_v35, %v742_v6 }
 0x1b2   : > { %v2428_v28 = vpop.f32.mrf.mxu1 }
 0x1b3   : > { %v864_v10 = vmax.f32 %v743_v9, 0.0  ;;  %1915 = vmatmul.msk.f32.gmra.mxu0 %vm427_vm0, %v409_v7 }
 0x1b5   : > { %1034 = vmatmul.f32.gmra.mxu1 %v864_v10  ;;  %v419_v10 = vld [vmem:[%s2190_s14 + $0x1e8] sm:$0xff] }
 0x1b8   : > { %v745_v11 = vpop.f32.mrf.mxu0 }
 0x1b9   : > { %v746_v15 = vadd.f32 %v2276_v35, %v745_v11 }
 0x1ba   : > { %v2433_v36 = vpop.f32.mrf.mxu1 }
 0x1bb   : > { %v865_v16 = vmax.f32 %v746_v15, 0.0  ;;  %1916 = vmatmul.msk.f32.gmra.mxu0 %vm427_vm0, %v410_v12 }
 0x1bd   : > { %1037 = vmatmul.f32.gmra.mxu1 %v865_v16  ;;  %v420_v16 = vld [vmem:[%s2190_s14 + $0x1f0] sm:$0xff] }
 0x1c0   : > { %v748_v17 = vpop.f32.mrf.mxu0 }
 0x1c1   : > { %v749_v19 = vadd.f32 %v2276_v35, %v748_v17 }
 0x1c2   : > { %v2439_v45 = vpop.f32.mrf.mxu1 }
 0x1c3   : > { %v866_v22 = vmax.f32 %v749_v19, 0.0  ;;  %1917 = vmatmul.msk.f32.gmra.mxu0 %vm427_vm0, %v411_v18 }
 0x1c5   : > { %1040 = vmatmul.f32.gmra.mxu1 %v866_v22 }
 0x1c8   : > { %v751_v23 = vpop.f32.mrf.mxu0 }
 0x1c9   : > { %v752_v25 = vadd.f32 %v2276_v35, %v751_v23  ;;  %v421_v23 = vld [vmem:[%s2190_s14 + $0x1f8] sm:$0xff]  ;;  %s2930_s14 = scalar_lea.sflag [#allocation3], %s336_s22 }
 0x1ca   : > { %v2445_v54 = vpop.f32.mrf.mxu1 }
 0x1cb   : > { %v867_v27 = vmax.f32 %v752_v25, 0.0  ;;  %1918 = vmatmul.msk.f32.gmra.mxu0 %vm427_vm0, %v412_v24 }
 0x1cd   : > { %1043 = vmatmul.f32.gmra.mxu1 %v867_v27 }
 0x1d0   : > { %v754_v29 = vpop.f32.mrf.mxu0 }
 0x1d1   : > { %v755_v31 = vadd.f32 %v2276_v35, %v754_v29  ;;  %v638_v29 = vadd.f32 %v2276_v35, %v2269_v33 }
 0x1d2   : > { %v2451_v0 = vpop.f32.mrf.mxu1 }
 0x1d3   : > { %v868_v34 = vmax.f32 %v755_v31, 0.0  ;;  %1919 = vmatmul.msk.f32.gmra.mxu0 %vm427_vm0, %v413_v30  ;;  %v829_v31 = vmax.f32 %v638_v29, 0.0  ;;  %v1200_v29 = vld [vmem:[%s2996_s5 + $0x70] sm:$0xff] }
 0x1d5   : > { %1046 = vmatmul.f32.gmra.mxu1 %v868_v34 }
 0x1d8   : > { %v757_v37 = vpop.f32.mrf.mxu0 }
 0x1d9   : > { %v758_v40 = vadd.f32 %v2276_v35, %v757_v37 }
 0x1da   : > { %v2456_v7 = vpop.f32.mrf.mxu1 }
 0x1db   : > { %v869_v42 = vmax.f32 %v758_v40, 0.0  ;;  %1920 = vmatmul.msk.f32.gmra.mxu0 %vm427_vm0, %v414_v38 }
 0x1dd   : > { %1049 = vmatmul.f32.gmra.mxu1 %v869_v42 }
 0x1e0   : > { %v760_v43 = vpop.f32.mrf.mxu0 }
 0x1e1   : > { %v761_v47 = vadd.f32 %v2276_v35, %v760_v43 }
 0x1e2   : > { %v2462_v17 = vpop.f32.mrf.mxu1 }
 0x1e3   : > { %v870_v49 = vmax.f32 %v761_v47, 0.0  ;;  %1921 = vmatmul.msk.f32.gmra.mxu0 %vm427_vm0, %v415_v44 }
 0x1e5   : > { %1052 = vmatmul.f32.gmra.mxu1 %v870_v49 }
 0x1e8   : > { %v763_v50 = vpop.f32.mrf.mxu0 }
 0x1e9   : > { %v764_v53 = vadd.f32 %v2276_v35, %v763_v50 }
 0x1ea   : > { %v2468_v25 = vpop.f32.mrf.mxu1 }
 0x1eb   : > { %v871_v57 = vmax.f32 %v764_v53, 0.0  ;;  %1922 = vmatmul.msk.f32.gmra.mxu0 %vm427_vm0, %v416_v52 }
 0x1ed   : > { %1055 = vmatmul.f32.gmra.mxu1 %v871_v57 }
 0x1f0   : > { %v766_v58 = vpop.f32.mrf.mxu0 }
 0x1f1   : > { %v767_v60 = vadd.f32 %v2276_v35, %v766_v58 }
 0x1f2   : > { %v2474_v38 = vpop.f32.mrf.mxu1 }
 0x1f3   : > { %v872_v62 = vmax.f32 %v767_v60, 0.0  ;;  %1923 = vmatmul.msk.f32.gmra.mxu0 %vm427_vm0, %v417_v59 }
 0x1f5   : > { %1058 = vmatmul.f32.gmra.mxu1 %v872_v62 }
 0x1f8   : > { %v769_v1 = vpop.f32.mrf.mxu0 }
 0x1f9   : > { %v770_v4 = vadd.f32 %v2276_v35, %v769_v1 }
 0x1fa   : > { %v2477_v44 = vpop.f32.mrf.mxu1 }
 0x1fb   : > { %v873_v6 = vmax.f32 %v770_v4, 0.0  ;;  %1924 = vmatmul.msk.f32.gmra.mxu0 %vm427_vm0, %v418_v3 }
 0x1fd   : > { %1061 = vmatmul.f32.gmra.mxu1 %v873_v6 }
 0x200   : > { %v772_v9 = vpop.f32.mrf.mxu0 }
 0x201   : > { %v773_v11 = vadd.f32 %v2276_v35, %v772_v9 }
 0x202   : > { %v2480_v52 = vpop.f32.mrf.mxu1 }
 0x203   : > { %v874_v12 = vmax.f32 %v773_v11, 0.0  ;;  %1925 = vmatmul.msk.f32.gmra.mxu0 %vm427_vm0, %v419_v10 }
 0x205   : > { %1064 = vmatmul.f32.gmra.mxu1 %v874_v12 }
 0x208   : > { %v775_v15 = vpop.f32.mrf.mxu0 }
 0x209   : > { %v776_v18 = vadd.f32 %v2276_v35, %v775_v15 }
 0x20a   : > { %v2484_v60 = vpop.f32.mrf.mxu1 }
 0x20b   : > { %v875_v19 = vmax.f32 %v776_v18, 0.0  ;;  %1926 = vmatmul.msk.f32.gmra.mxu0 %vm427_vm0, %v420_v16 }
 0x20d   : > { %1067 = vmatmul.f32.gmra.mxu1 %v875_v19 }
 0x210   : > { %v778_v22 = vpop.f32.mrf.mxu0 }
 0x211   : > { %v779_v24 = vadd.f32 %v2276_v35, %v778_v22 }
 0x212   : > { %v2487_v6 = vpop.f32.mrf.mxu1 }
 0x213   : > { %v876_v27 = vmax.f32 %v779_v24, 0.0  ;;  %1927 = vmatmul.msk.f32.gmra.mxu0 %vm427_vm0, %v421_v23 }
 0x215   : > { %1070 = vmatmul.f32.gmra.mxu1 %v876_v27  ;;  %v1201_v27 = vld [vmem:[%s2996_s5 + $0x78] sm:$0xff] }
 0x216   : > { %1206 = vmatpush.msra.mxu2 %v1201_v27  ;;  %v1186_v27 = vld [vmem:[%s2996_s5] sm:$0xff] }
 0x218   : > { %v781_v30 = vpop.f32.mrf.mxu0  ;;  %1207 = vmatpush.msra.mxu2 %v1200_v29 }
 0x219   : > { %v782_v34 = vadd.f32 %v2276_v35, %v781_v30 }
 0x21a   : > { %v2490_v12 = vpop.f32.mrf.mxu1 }
 0x21b   : > { %v877_v37 = vmax.f32 %v782_v34, 0.0  ;;  %929 = vmatmul.f32.vlgmr.msrb.gmra.mxu0 %v829_v31  ;;  %v1199_v34 = vld [vmem:[%s2996_s5 + $0x68] sm:$0xff] }
 0x21c   : > { %1208 = vmatpush.msra.mxu2 %v1199_v34 }
 0x21d   : > { %1073 = vmatmul.f32.gmra.mxu1 %v877_v37 }
 0x220   : > { %v784_v40 = vpop.f32.mrf.mxu0 }
 0x221   : > { %v785_v42 = vadd.f32 %v2276_v35, %v784_v40 }
 0x222   : > { %v2493_v22 = vpop.f32.mrf.mxu1 }
 0x223   : > { %v878_v43 = vmax.f32 %v785_v42, 0.0  ;;  %v1198_v42 = vld [vmem:[%s2996_s5 + $0x60] sm:$0xff] }
 0x224   : > { %1209 = vmatpush.msra.mxu2 %v1198_v42 }
 0x225   : > { %1076 = vmatmul.f32.gmra.mxu1 %v878_v43  ;;  %v1197_v43 = vld [vmem:[%s2996_s5 + $0x58] sm:$0xff] }
 0x226   : > { %1210 = vmatpush.msra.mxu2 %v1197_v43 }
 0x228   : > { %v787_v47 = vpop.f32.mrf.mxu0 }
 0x229   : > { %v788_v33 = vadd.f32 %v2276_v35, %v787_v47  ;;  %v1196_v47 = vld [vmem:[%s2996_s5 + $0x50] sm:$0xff] }
 0x22a   : > { %v2506_v37 = vpop.f32.mrf.mxu1  ;;  %1211 = vmatpush.msra.mxu2 %v1196_v47 }
 0x22b   : > { %v879_v49 = vmax.f32 %v788_v33, 0.0 }
 0x22d   : > { %1079 = vmatmul.f32.gmra.mxu1 %v879_v49 }
 0x230   : > { %v790_v50 = vpop.f32.mrf.mxu0 }
 0x231   : > { %v791_v53 = vadd.f32 %v2276_v35, %v790_v50  ;;  %v1195_v50 = vld [vmem:[%s2996_s5 + $0x48] sm:$0xff] }
 0x232   : > { %1212 = vmatpush.msra.mxu2 %v1195_v50 }
 0x233   : > { %v880_v57 = vmax.f32 %v791_v53, 0.0 }
 0x235   : > { %1082 = vmatmul.f32.gmra.mxu1 %v880_v57  ;;  %v1194_v57 = vld [vmem:[%s2996_s5 + $0x40] sm:$0xff] }
 0x236   : > { %1213 = vmatpush.msra.mxu2 %v1194_v57  ;;  %v2566_v57 = vld [vmem:[%s2995_s4] ss:$0 sm:$0xff] }
 0x238   : > { %v793_v58 = vpop.f32.mrf.mxu0 }
 0x239   : > { %v794_v59 = vadd.f32 %v2276_v35, %v793_v58  ;;  %v2524_v58 = vpop.f32.mrf.mxu1 }
 0x23b   : > { %v881_v62 = vmax.f32 %v794_v59, 0.0  ;;  %v1193_v59 = vld [vmem:[%s2996_s5 + $0x38] sm:$0xff] }
 0x23c   : > { %1214 = vmatpush.msra.mxu2 %v1193_v59 }
 0x23d   : > { %1085 = vmatmul.f32.gmra.mxu1 %v881_v62  ;;  %v1192_v62 = vld [vmem:[%s2996_s5 + $0x30] sm:$0xff] }
 0x23e   : > { %1215 = vmatpush.msra.mxu2 %v1192_v62 }
 0x240   : > { %v796_v1 = vpop.f32.mrf.mxu0 }
 0x241   : > { %v797_v3 = vadd.f32 %v2276_v35, %v796_v1 }
 0x243   : > { %v882_v4 = vmax.f32 %v797_v3, 0.0 }
 0x245   : > { %1088 = vmatmul.f32.gmra.mxu1 %v882_v4  ;;  %v1191_v4 = vld [vmem:[%s2996_s5 + $0x28] sm:$0xff] }
 0x246   : > { %1216 = vmatpush.msra.mxu2 %v1191_v4 }
 0x248   : > { %v799_v9 = vpop.f32.mrf.mxu0 }
 0x249   : > { %v800_v10 = vadd.f32 %v2276_v35, %v799_v9 }
 0x24b   : > { %v883_v11 = vmax.f32 %v800_v10, 0.0  ;;  %v1190_v10 = vld [vmem:[%s2996_s5 + $0x20] sm:$0xff] }
 0x24c   : > { %1217 = vmatpush.msra.mxu2 %v1190_v10  ;;  %v940_v10 = vadd.f32 %v2566_v57, %v2338_v51  ;;  %v952_v51 = vadd.f32 %v2566_v57, %v2359_v8  ;;  %v1493_v8 = vld [vmem:[%s2998_s7 + $0x70] sm:$0xff] }
 0x24d   : > { %1091 = vmatmul.f32.gmra.mxu1 %v883_v11  ;;  %v1189_v11 = vld [vmem:[%s2996_s5 + $0x18] sm:$0xff] }
 0x24e   : > { %1218 = vmatpush.msra.mxu2 %v1189_v11  ;;  %v1125_v11 = vmax.f32 %v940_v10, 0.0  ;;  %v1479_v10 = vld [vmem:[%s2998_s7] sm:$0xff] }
 0x250   : > { %v802_v15 = vpop.f32.mrf.mxu0 }
 0x251   : > { %v803_v16 = vadd.f32 %v2276_v35, %v802_v15  ;;  %v2542_v15 = vpop.f32.mrf.mxu1 }
 0x253   : > { %v884_v18 = vmax.f32 %v803_v16, 0.0  ;;  %v1188_v16 = vld [vmem:[%s2996_s5 + $0x10] sm:$0xff] }
 0x254   : > { %1219 = vmatpush.msra.mxu2 %v1188_v16  ;;  %v943_v16 = vadd.f32 %v2566_v57, %v2343_v56  ;;  %v955_v56 = vadd.f32 %v2566_v57, %v2364_v13  ;;  %v1492_v13 = vld [vmem:[%s2998_s7 + $0x68] sm:$0xff] }
 0x255   : > { %1094 = vmatmul.f32.gmra.mxu1 %v884_v18 }
 0x258   : > { %v805_v19 = vpop.f32.mrf.mxu0 }
 0x259   : > { %v806_v23 = vadd.f32 %v2276_v35, %v805_v19 }
 0x25b   : > { %v885_v24 = vmax.f32 %v806_v23, 0.0  ;;  %v1187_v23 = vld [vmem:[%s2996_s5 + $0x8] sm:$0xff] }
 0x25c   : > { %1220 = vmatpush.msra.mxu2 %v1187_v23 }
 0x25d   : > { %1097 = vmatmul.f32.gmra.mxu1 %v885_v24 }
 0x25e   : > { %1221 = vmatpush.msra.mxu2 %v1186_v27  ;;  %v1130_v27 = vmax.f32 %v955_v56, 0.0 }
 0x260   : > { %v808_v30 = vpop.f32.mrf.mxu0 }
 0x261   : > { %v809_v31 = vadd.f32 %v2276_v35, %v808_v30  ;;  %v2554_v30 = vpop.f32.mrf.mxu1 }
 0x263   : > { %v886_v40 = vmax.f32 %v809_v31, 0.0 }
 0x265   : > { %1100 = vmatmul.f32.gmra.mxu1 %v886_v40 }
 0x268   : > { %v811_v33 = vpop.f32.mrf.mxu0 }
 0x269   : > { %v812_v49 = vadd.f32 %v2276_v35, %v811_v33  ;;  %v2558_v43 = vpop.f32.mrf.mxu1 }
 0x26b   : > { %v887_v53 = vmax.f32 %v812_v49, 0.0 }
 0x26d   : > { %1103 = vmatmul.f32.gmra.mxu1 %v887_v53 }
 0x270   : > { %v814_v1 = vpop.f32.mrf.mxu0 }
 0x271   : > { %v815_v3 = vadd.f32 %v2276_v35, %v814_v1  ;;  %v2561_v53 = vpop.f32.mrf.mxu1 }
 0x273   : > { %v888_v9 = vmax.f32 %v815_v3, 0.0  ;;  %v934_v3 = vadd.f32 %v2566_v57, %v2328_v41  ;;  %v946_v41 = vadd.f32 %v2566_v57, %v2348_v61  ;;  %v958_v61 = vadd.f32 %v2566_v57, %v2370_v20 }
 0x275   : > { %1106 = vmatmul.f32.gmra.mxu1 %v888_v9  ;;  %v1123_v4 = vmax.f32 %v934_v3, 0.0 }
 0x278   : > { %v817_v18 = vpop.f32.mrf.mxu0 }
 0x279   : > { %v818_v19 = vadd.f32 %v2276_v35, %v817_v18  ;;  %v1126_v18 = vmax.f32 %v943_v16, 0.0 }
 0x27b   : > { %v889_v24 = vmax.f32 %v818_v19, 0.0  ;;  %v1127_v19 = vmax.f32 %v946_v41, 0.0 }
 0x27d   : > { %1109 = vmatmul.f32.gmra.mxu1 %v889_v24  ;;  %v1129_v24 = vmax.f32 %v952_v51, 0.0 }
 0x280   : > { %v820_v29 = vpop.f32.mrf.mxu0 }
 0x281   : > { %v821_v31 = vadd.f32 %v2276_v35, %v820_v29  ;;  %v1131_v29 = vmax.f32 %v958_v61, 0.0 }
 0x283   : > { %v890_v34 = vmax.f32 %v821_v31, 0.0  ;;  %v961_v31 = vadd.f32 %v2566_v57, %v2376_v26  ;;  %v1489_v26 = vld [vmem:[%s2998_s7 + $0x50] sm:$0xff] }
 0x285   : > { %1112 = vmatmul.f32.gmra.mxu1 %v890_v34  ;;  %v1132_v20 = vmax.f32 %v961_v31, 0.0  ;;  %v1491_v34 = vld [vmem:[%s2998_s7 + $0x60] sm:$0xff] }
 0x288   : > { %v823_v40 = vpop.f32.mrf.mxu0 }
 0x289   : > { %v824_v42 = vadd.f32 %v2276_v35, %v823_v40  ;;  %v1490_v40 = vld [vmem:[%s2998_s7 + $0x58] sm:$0xff] }
 0x28b   : > { %v891_v47 = vmax.f32 %v824_v42, 0.0  ;;  %v964_v42 = vadd.f32 %v2566_v57, %v2382_v32  ;;  %v1485_v32 = vld [vmem:[%s2998_s7 + $0x30] sm:$0xff] }
 0x28d   : > { %1115 = vmatmul.f32.gmra.mxu1 %v891_v47  ;;  %v1488_v47 = vld [vmem:[%s2998_s7 + $0x48] sm:$0xff] }
 0x290   : > { %v826_v33 = vpop.f32.mrf.mxu0 }
 0x291   : > { %v827_v49 = vadd.f32 %v2276_v35, %v826_v33  ;;  %v937_v35 = vadd.f32 %v2566_v57, %v2333_v46  ;;  %v949_v46 = vadd.f32 %v2566_v57, %v2353_v2  ;;  %v1494_v2 = vld [vmem:[%s2998_s7 + $0x78] sm:$0xff]  ;;  %v1133_v33 = vmax.f32 %v964_v42, 0.0 }
 0x292   : > { %1499 = vmatpush.msra.mxu3 %v1494_v2 }
 0x293   : > { %v892_v50 = vmax.f32 %v827_v49, 0.0  ;;  %v1124_v9 = vmax.f32 %v937_v35, 0.0  ;;  %v1128_v23 = vmax.f32 %v949_v46, 0.0  ;;  %v1487_v49 = vld [vmem:[%s2998_s7 + $0x40] sm:$0xff]  ;;  %v1481_v35 = vld [vmem:[%s2998_s7 + $0x10] sm:$0xff] }
 0x294   : > { %1500 = vmatpush.msra.mxu3 %v1493_v8 }
 0x295   : > { %1118 = vmatmul.f32.gmra.mxu1 %v892_v50  ;;  %v1486_v50 = vld [vmem:[%s2998_s7 + $0x38] sm:$0xff] }
 0x296   : > { %1501 = vmatpush.msra.mxu3 %v1492_v13 }
 0x298   : > { %v930_v59 = vpop.f32.mrf.mxu0  ;;  %1502 = vmatpush.msra.mxu3 %v1491_v34 }
 0x299   : > { %v931_v62 = vadd.f32 %v2566_v57, %v930_v59  ;;  %v967_v59 = vadd.f32 %v2566_v57, %v2387_v39  ;;  %v970_v39 = vadd.f32 %v2566_v57, %v2393_v48  ;;  %v973_v48 = vadd.f32 %v2566_v57, %v2399_v55 }
 0x29a   : > { %1503 = vmatpush.msra.mxu3 %v1490_v40  ;;  %v982_v55 = vadd.f32 %v2566_v57, %v2416_v14  ;;  %v988_v14 = vadd.f32 %v2566_v57, %v2428_v28  ;;  %v994_v28 = vadd.f32 %v2566_v57, %v2439_v45  ;;  %v1000_v45 = vadd.f32 %v2566_v57, %v2451_v0 }
 0x29b   : > { %v1122_v1 = vmax.f32 %v931_v62, 0.0  ;;  %v1484_v62 = vld [vmem:[%s2998_s7 + $0x28] sm:$0xff]  ;;  %v1134_v3 = vmax.f32 %v967_v59, 0.0  ;;  %v1136_v16 = vmax.f32 %v973_v48, 0.0  ;;  %v1006_v0 = vadd.f32 %v2566_v57, %v2462_v17 }
 0x29c   : > { %1504 = vmatpush.msra.mxu3 %v1489_v26  ;;  %v1139_v56 = vmax.f32 %v982_v55, 0.0  ;;  %v1141_v13 = vmax.f32 %v988_v14, 0.0  ;;  %v1012_v17 = vadd.f32 %v2566_v57, %v2474_v38  ;;  %v1018_v38 = vadd.f32 %v2566_v57, %v2480_v52 }
 0x29d   : > { %1222 = vmatmul.f32.vlgmr.msra.gmra.mxu2 %v1122_v1  ;;  %v1483_v1 = vld [vmem:[%s2998_s7 + $0x20] sm:$0xff]  ;;  %v1024_v52 = vadd.f32 %v2566_v57, %v2487_v6  ;;  %v1030_v6 = vadd.f32 %v2566_v57, %v2493_v22  ;;  %v1033_v22 = vadd.f32 %v2566_v57, %v2506_v37 }
 0x29e   : > { %1505 = vmatpush.msra.mxu3 %v1488_v47 }
 0x2a0   : > { %1506 = vmatpush.msra.mxu3 %v1487_v49  ;;  %v1143_v49 = vmax.f32 %v994_v28, 0.0 }
 0x2a2   : > { %1507 = vmatpush.msra.mxu3 %v1486_v50 }
 0x2a4   : > { %1508 = vmatpush.msra.mxu3 %v1485_v32 }
 0x2a5   : > { %1225 = vmatmul.f32.gmra.mxu2 %v1123_v4  ;;  %v1482_v4 = vld [vmem:[%s2998_s7 + $0x18] sm:$0xff] }
 0x2a6   : > { %1509 = vmatpush.msra.mxu3 %v1484_v62 }
 0x2a8   : > { %1510 = vmatpush.msra.mxu3 %v1483_v1 }
 0x2aa   : > { %1511 = vmatpush.msra.mxu3 %v1482_v4 }
 0x2ac   : > { %1512 = vmatpush.msra.mxu3 %v1481_v35 }
 0x2ad   : > { %1228 = vmatmul.f32.gmra.mxu2 %v1124_v9  ;;  %v1480_v9 = vld [vmem:[%s2998_s7 + $0x8] sm:$0xff] }
 0x2ae   : > { %1513 = vmatpush.msra.mxu3 %v1480_v9 }
 0x2b0   : > { %1514 = vmatpush.msra.mxu3 %v1479_v10 }
 0x2b5   : > { %1231 = vmatmul.f32.gmra.mxu2 %v1125_v11  ;;  %v1135_v11 = vmax.f32 %v970_v39, 0.0  ;;  %v1145_v39 = vmax.f32 %v1000_v45, 0.0 }
 0x2bd   : > { %1234 = vmatmul.f32.gmra.mxu2 %v1126_v18  ;;  %v976_v18 = vadd.f32 %v2566_v57, %v2405_v63 }
 0x2bf   : > { %v1137_v41 = vmax.f32 %v976_v18, 0.0 }
 0x2c5   : > { %1237 = vmatmul.f32.gmra.mxu2 %v1127_v19  ;;  %v979_v19 = vadd.f32 %v2566_v57, %v2410_v5  ;;  %v985_v5 = vadd.f32 %v2566_v57, %v2422_v21  ;;  %v991_v21 = vadd.f32 %v2566_v57, %v2433_v36  ;;  %v997_v36 = vadd.f32 %v2566_v57, %v2445_v54 }
 0x2c6   : > { %v1003_v54 = vadd.f32 %v2566_v57, %v2456_v7  ;;  %v1009_v7 = vadd.f32 %v2566_v57, %v2468_v25  ;;  %v1015_v25 = vadd.f32 %v2566_v57, %v2477_v44  ;;  %v1021_v44 = vadd.f32 %v2566_v57, %v2484_v60 }
 0x2c7   : > { %v1138_v46 = vmax.f32 %v979_v19, 0.0  ;;  %v1142_v26 = vmax.f32 %v991_v21, 0.0  ;;  %v1144_v62 = vmax.f32 %v997_v36, 0.0  ;;  %v1027_v60 = vadd.f32 %v2566_v57, %v2490_v12  ;;  %v2713_v12 = vld [vmem:[%s2999_s8] ss:$0 sm:$0xff] }
 0x2c9   : > { %v1154_v36 = vmax.f32 %v1027_v60, 0.0 }
 0x2cd   : > { %1240 = vmatmul.f32.gmra.mxu2 %v1128_v23  ;;  %v2652_v23 = vld [vmem:[%s2997_s6] ss:$0 sm:$0xff] }
 0x2d5   : > { %1243 = vmatmul.f32.gmra.mxu2 %v1129_v24 }
 0x2dd   : > { %1246 = vmatmul.f32.gmra.mxu2 %v1130_v27 }
 0x2e5   : > { %1249 = vmatmul.f32.gmra.mxu2 %v1131_v29  ;;  %v1140_v29 = vmax.f32 %v985_v5, 0.0  ;;  %v1149_v5 = vmax.f32 %v1012_v17, 0.0 }
 0x2ed   : > { %1252 = vmatmul.f32.gmra.mxu2 %v1132_v20 }
 0x2f5   : > { %1255 = vmatmul.f32.gmra.mxu2 %v1133_v33 }
 0x2fd   : > { %1258 = vmatmul.f32.gmra.mxu2 %v1134_v3 }
 0x305   : > { %1261 = vmatmul.f32.gmra.mxu2 %v1135_v11  ;;  %v1146_v11 = vmax.f32 %v1003_v54, 0.0 }
 0x30d   : > { %1264 = vmatmul.f32.gmra.mxu2 %v1136_v16 }
 0x315   : > { %1267 = vmatmul.f32.gmra.mxu2 %v1137_v41  ;;  %v1147_v41 = vmax.f32 %v1006_v0, 0.0 }
 0x31d   : > { %1270 = vmatmul.f32.gmra.mxu2 %v1138_v46 }
 0x320   : > { %v1223_v51 = vpop.f32.mrf.mxu2 }
 0x321   : > { %v1224_v24 = vadd.f32 %v2652_v23, %v1223_v51  ;;  %v1148_v51 = vmax.f32 %v1009_v7, 0.0  ;;  %v1039_v7 = vadd.f32 %v2566_v57, %v2542_v15 }
 0x323   : > { %v1415_v63 = vmax.f32 %v1224_v24, 0.0  ;;  %v1158_v17 = vmax.f32 %v1039_v7, 0.0 }
 0x325   : > { %1273 = vmatmul.f32.gmra.mxu2 %v1139_v56  ;;  %1515 = vmatmul.f32.vlgmr.msra.gmra.mxu3 %v1415_v63 }
 0x328   : > { %v1226_v27 = vpop.f32.mrf.mxu2 }
 0x329   : > { %v1227_v61 = vadd.f32 %v2652_v23, %v1226_v27 }
 0x32b   : > { %v1416_v2 = vmax.f32 %v1227_v61, 0.0 }
 0x32d   : > { %1276 = vmatmul.f32.gmra.mxu2 %v1140_v29  ;;  %1518 = vmatmul.f32.gmra.mxu3 %v1416_v2  ;;  %v1150_v2 = vmax.f32 %v1015_v25, 0.0 }
 0x330   : > { %v1229_v8 = vpop.f32.mrf.mxu2 }
 0x331   : > { %v1230_v31 = vadd.f32 %v2652_v23, %v1229_v8 }
 0x333   : > { %v1417_v20 = vmax.f32 %v1230_v31, 0.0 }
 0x335   : > { %1279 = vmatmul.f32.gmra.mxu2 %v1141_v13  ;;  %1521 = vmatmul.f32.gmra.mxu3 %v1417_v20  ;;  %v1151_v13 = vmax.f32 %v1018_v38, 0.0 }
 0x338   : > { %v1232_v34 = vpop.f32.mrf.mxu2 }
 0x339   : > { %v1233_v40 = vadd.f32 %v2652_v23, %v1232_v34 }
 0x33b   : > { %v1418_v42 = vmax.f32 %v1233_v40, 0.0  ;;  %v1152_v40 = vmax.f32 %v1021_v44, 0.0 }
 0x33d   : > { %1282 = vmatmul.f32.gmra.mxu2 %v1142_v26  ;;  %1524 = vmatmul.f32.gmra.mxu3 %v1418_v42 }
 0x340   : > { %v1235_v47 = vpop.f32.mrf.mxu2 }
 0x341   : > { %v1236_v33 = vadd.f32 %v2652_v23, %v1235_v47  ;;  %v1153_v47 = vmax.f32 %v1024_v52, 0.0 }
 0x343   : > { %v1419_v50 = vmax.f32 %v1236_v33, 0.0 }
 0x345   : > { %1285 = vmatmul.f32.gmra.mxu2 %v1143_v49  ;;  %1527 = vmatmul.f32.gmra.mxu3 %v1419_v50 }
 0x348   : > { %v1238_v32 = vpop.f32.mrf.mxu2 }
 0x349   : > { %v1239_v59 = vadd.f32 %v2652_v23, %v1238_v32 }
 0x34b   : > { %v1420_v1 = vmax.f32 %v1239_v59, 0.0 }
 0x34d   : > { %1288 = vmatmul.f32.gmra.mxu2 %v1144_v62  ;;  %1530 = vmatmul.f32.gmra.mxu3 %v1420_v1  ;;  %v1155_v1 = vmax.f32 %v1030_v6, 0.0 }
 0x350   : > { %v1241_v3 = vpop.f32.mrf.mxu2 }
 0x351   : > { %v1242_v4 = vadd.f32 %v2652_v23, %v1241_v3  ;;  %v2706_v3 = vpop.f32.mrf.mxu1 }
 0x353   : > { %v1421_v35 = vmax.f32 %v1242_v4, 0.0 }
 0x355   : > { %1291 = vmatmul.f32.gmra.mxu2 %v1145_v39  ;;  %1533 = vmatmul.f32.gmra.mxu3 %v1421_v35 }
 0x358   : > { %v1244_v9 = vpop.f32.mrf.mxu2 }
 0x359   : > { %v1245_v10 = vadd.f32 %v2652_v23, %v1244_v9  ;;  %v1156_v9 = vmax.f32 %v1033_v22, 0.0 }
 0x35b   : > { %v1422_v48 = vmax.f32 %v1245_v10, 0.0 }
 0x35d   : > { %1294 = vmatmul.f32.gmra.mxu2 %v1146_v11  ;;  %1536 = vmatmul.f32.gmra.mxu3 %v1422_v48  ;;  %v1036_v11 = vadd.f32 %v2566_v57, %v2524_v58  ;;  %v2724_v48 = vpop.f32.mrf.mxu1 }
 0x360   : > { %v1247_v16 = vpop.f32.mrf.mxu2 }
 0x361   : > { %v1248_v18 = vadd.f32 %v2652_v23, %v1247_v16 }
 0x363   : > { %v1423_v19 = vmax.f32 %v1248_v18, 0.0 }
 0x365   : > { %1297 = vmatmul.f32.gmra.mxu2 %v1147_v41  ;;  %1539 = vmatmul.f32.gmra.mxu3 %v1423_v19  ;;  %v1157_v41 = vmax.f32 %v1036_v11, 0.0  ;;  %v1056_v58 = vpop.f32.mrf.mxu1 }
 0x368   : > { %v1250_v46 = vpop.f32.mrf.mxu2 }
 0x369   : > { %v1251_v55 = vadd.f32 %v2652_v23, %v1250_v46 }
 0x36b   : > { %v1424_v24 = vmax.f32 %v1251_v55, 0.0 }
 0x36d   : > { %1300 = vmatmul.f32.gmra.mxu2 %v1148_v51  ;;  %1542 = vmatmul.f32.gmra.mxu3 %v1424_v24 }
 0x370   : > { %v1253_v56 = vpop.f32.mrf.mxu2 }
 0x371   : > { %v1254_v63 = vadd.f32 %v2652_v23, %v1253_v56 }
 0x373   : > { %v1425_v27 = vmax.f32 %v1254_v63, 0.0  ;;  %v1042_v63 = vadd.f32 %v2566_v57, %v2554_v30 }
 0x375   : > { %1303 = vmatmul.f32.gmra.mxu2 %v1149_v5  ;;  %1545 = vmatmul.f32.gmra.mxu3 %v1425_v27 }
 0x378   : > { %v1256_v61 = vpop.f32.mrf.mxu2 }
 0x379   : > { %v1257_v29 = vadd.f32 %v2652_v23, %v1256_v61  ;;  %v1159_v61 = vmax.f32 %v1042_v63, 0.0 }
 0x37b   : > { %v1426_v14 = vmax.f32 %v1257_v29, 0.0  ;;  %v1059_v29 = vpop.f32.mrf.mxu1 }
 0x37d   : > { %1306 = vmatmul.f32.gmra.mxu2 %v1150_v2  ;;  %1548 = vmatmul.f32.gmra.mxu3 %v1426_v14  ;;  %v1045_v14 = vadd.f32 %v2566_v57, %v2558_v43 }
 0x380   : > { %v1259_v8 = vpop.f32.mrf.mxu2 }
 0x381   : > { %v1260_v31 = vadd.f32 %v2652_v23, %v1259_v8 }
 0x383   : > { %v1427_v20 = vmax.f32 %v1260_v31, 0.0  ;;  %v1062_v44 = vpop.f32.mrf.mxu1 }
 0x385   : > { %1309 = vmatmul.f32.gmra.mxu2 %v1151_v13  ;;  %1551 = vmatmul.f32.gmra.mxu3 %v1427_v20  ;;  %v1160_v13 = vmax.f32 %v1045_v14, 0.0 }
 0x388   : > { %v1262_v21 = vpop.f32.mrf.mxu2 }
 0x389   : > { %v1263_v34 = vadd.f32 %v2652_v23, %v1262_v21  ;;  %v1048_v21 = vadd.f32 %v2566_v57, %v2561_v53 }
 0x38b   : > { %v1428_v26 = vmax.f32 %v1263_v34, 0.0  ;;  %v1161_v52 = vmax.f32 %v1048_v21, 0.0 }
 0x38d   : > { %1312 = vmatmul.f32.gmra.mxu2 %v1152_v40  ;;  %1554 = vmatmul.f32.gmra.mxu3 %v1428_v26 }
 0x390   : > { %v1265_v42 = vpop.f32.mrf.mxu2 }
 0x391   : > { %v1266_v28 = vadd.f32 %v2652_v23, %v1265_v42 }
 0x393   : > { %v1429_v33 = vmax.f32 %v1266_v28, 0.0  ;;  %v1051_v28 = vadd.f32 %v2566_v57, %v2706_v3 }
 0x395   : > { %1315 = vmatmul.f32.gmra.mxu2 %v1153_v47  ;;  %1557 = vmatmul.f32.gmra.mxu3 %v1429_v33  ;;  %v1065_v47 = vpop.f32.mrf.mxu1 }
 0x398   : > { %v1268_v49 = vpop.f32.mrf.mxu2 }
 0x399   : > { %v1269_v50 = vadd.f32 %v2652_v23, %v1268_v49 }
 0x39b   : > { %v1430_v32 = vmax.f32 %v1269_v50, 0.0  ;;  %v1162_v50 = vmax.f32 %v1051_v28, 0.0 }
 0x39d   : > { %1318 = vmatmul.f32.gmra.mxu2 %v1154_v36  ;;  %1560 = vmatmul.f32.gmra.mxu3 %v1430_v32  ;;  %v1054_v32 = vadd.f32 %v2566_v57, %v2724_v48 }
 0x39f   : > { %v1163_v3 = vmax.f32 %v1054_v32, 0.0 }
 0x3a0   : > { %v1271_v59 = vpop.f32.mrf.mxu2 }
 0x3a1   : > { %v1272_v62 = vadd.f32 %v2652_v23, %v1271_v59 }
 0x3a3   : > { %v1431_v45 = vmax.f32 %v1272_v62, 0.0  ;;  %v1068_v62 = vpop.f32.mrf.mxu1 }
 0x3a5   : > { %1321 = vmatmul.f32.gmra.mxu2 %v1155_v1  ;;  %1563 = vmatmul.f32.gmra.mxu3 %v1431_v45 }
 0x3a8   : > { %v1274_v4 = vpop.f32.mrf.mxu2  ;;  %v1516_v39 = vpop.f32.mrf.mxu3 }
 0x3a9   : > { %v1275_v35 = vadd.f32 %v2652_v23, %v1274_v4  ;;  %v1517_v54 = vadd.f32 %v2713_v12, %v1516_v39  ;;  %v1057_v4 = vadd.f32 %v2566_v57, %v1056_v58 }
 0x3ab   : > { %1708 = vst [vmem:[%s2719_s27] sm:$0xff] %v1517_v54  ;;  %v1432_v10 = vmax.f32 %v1275_v35, 0.0  ;;  %v1071_v11 = vpop.f32.mrf.mxu1 }
 0x3ad   : > { %1324 = vmatmul.f32.gmra.mxu2 %v1156_v9  ;;  %1566 = vmatmul.f32.gmra.mxu3 %v1432_v10  ;;  %v1164_v10 = vmax.f32 %v1057_v4, 0.0 }
 0x3b0   : > { %v1277_v37 = vpop.f32.mrf.mxu2  ;;  %v1519_v0 = vpop.f32.mrf.mxu3 }
 0x3b1   : > { %v1278_v16 = vadd.f32 %v2652_v23, %v1277_v37  ;;  %v1520_v18 = vadd.f32 %v2713_v12, %v1519_v0  ;;  %v1060_v37 = vadd.f32 %v2566_v57, %v1059_v29 }
 0x3b3   : > { %1709 = vst [vmem:[%s2719_s27 + $0x8] sm:$0xff] %v1520_v18  ;;  %v1433_v19 = vmax.f32 %v1278_v16, 0.0 }
 0x3b5   : > { %1327 = vmatmul.f32.gmra.mxu2 %v1157_v41  ;;  %1569 = vmatmul.f32.gmra.mxu3 %v1433_v19  ;;  %v1165_v19 = vmax.f32 %v1060_v37, 0.0 }
 0x3b8   : > { %v1280_v46 = vpop.f32.mrf.mxu2  ;;  %v1522_v55 = vpop.f32.mrf.mxu3 }
 0x3b9   : > { %v1281_v51 = vadd.f32 %v2652_v23, %v1280_v46  ;;  %v1523_v24 = vadd.f32 %v2713_v12, %v1522_v55  ;;  %v1074_v46 = vpop.f32.mrf.mxu1  ;;  %v1063_v55 = vadd.f32 %v2566_v57, %v1062_v44 }
 0x3bb   : > { %1710 = vst [vmem:[%s2719_s27 + $0x10] sm:$0xff] %v1523_v24  ;;  %v1434_v56 = vmax.f32 %v1281_v51, 0.0 }
 0x3bd   : > { %1330 = vmatmul.f32.gmra.mxu2 %v1158_v17  ;;  %1572 = vmatmul.f32.gmra.mxu3 %v1434_v56  ;;  %v1166_v56 = vmax.f32 %v1063_v55, 0.0 }
 0x3c0   : > { %v1283_v5 = vpop.f32.mrf.mxu2  ;;  %v1525_v27 = vpop.f32.mrf.mxu3 }
 0x3c1   : > { %v1284_v15 = vadd.f32 %v2652_v23, %v1283_v5  ;;  %v1526_v25 = vadd.f32 %v2713_v12, %v1525_v27  ;;  %v1066_v5 = vadd.f32 %v2566_v57, %v1065_v47  ;;  %v1077_v27 = vpop.f32.mrf.mxu1 }
 0x3c3   : > { %1711 = vst [vmem:[%s2719_s27 + $0x18] sm:$0xff] %v1526_v25  ;;  %v1435_v2 = vmax.f32 %v1284_v15, 0.0 }
 0x3c5   : > { %1333 = vmatmul.f32.gmra.mxu2 %v1159_v61  ;;  %1575 = vmatmul.f32.gmra.mxu3 %v1435_v2  ;;  %v1167_v2 = vmax.f32 %v1066_v5, 0.0 }
 0x3c8   : > { %v1286_v38 = vpop.f32.mrf.mxu2  ;;  %v1528_v8 = vpop.f32.mrf.mxu3 }
 0x3c9   : > { %v1287_v30 = vadd.f32 %v2652_v23, %v1286_v38  ;;  %v1529_v31 = vadd.f32 %v2713_v12, %v1528_v8  ;;  %v1069_v38 = vadd.f32 %v2566_v57, %v1068_v62 }
 0x3cb   : > { %1712 = vst [vmem:[%s2719_s27 + $0x20] sm:$0xff] %v1529_v31  ;;  %v1436_v20 = vmax.f32 %v1287_v30, 0.0  ;;  %v1080_v31 = vpop.f32.mrf.mxu1  ;;  %v1168_v44 = vmax.f32 %v1069_v38, 0.0 }
 0x3cd   : > { %1336 = vmatmul.f32.gmra.mxu2 %v1160_v13  ;;  %1578 = vmatmul.f32.gmra.mxu3 %v1436_v20 }
 0x3d0   : > { %v1289_v34 = vpop.f32.mrf.mxu2  ;;  %v1531_v40 = vpop.f32.mrf.mxu3 }
 0x3d1   : > { %v1290_v43 = vadd.f32 %v2652_v23, %v1289_v34  ;;  %v1532_v26 = vadd.f32 %v2713_v12, %v1531_v40  ;;  %v1072_v34 = vadd.f32 %v2566_v57, %v1071_v11 }
 0x3d3   : > { %1713 = vst [vmem:[%s2719_s27 + $0x28] sm:$0xff] %v1532_v26  ;;  %v1437_v42 = vmax.f32 %v1290_v43, 0.0  ;;  %v1083_v28 = vpop.f32.mrf.mxu1 }
 0x3d5   : > { %1339 = vmatmul.f32.gmra.mxu2 %v1161_v52  ;;  %1581 = vmatmul.f32.gmra.mxu3 %v1437_v42  ;;  %v1169_v42 = vmax.f32 %v1072_v34, 0.0 }
 0x3d8   : > { %v1292_v33 = vpop.f32.mrf.mxu2  ;;  %v1534_v60 = vpop.f32.mrf.mxu3 }
 0x3d9   : > { %v1293_v53 = vadd.f32 %v2652_v23, %v1292_v33  ;;  %v1535_v49 = vadd.f32 %v2713_v12, %v1534_v60  ;;  %v1075_v33 = vadd.f32 %v2566_v57, %v1074_v46 }
 0x3db   : > { %1714 = vst [vmem:[%s2719_s27 + $0x30] sm:$0xff] %v1535_v49  ;;  %v1438_v36 = vmax.f32 %v1293_v53, 0.0 }
 0x3dd   : > { %1342 = vmatmul.f32.gmra.mxu2 %v1162_v50  ;;  %1584 = vmatmul.f32.gmra.mxu3 %v1438_v36  ;;  %v1170_v36 = vmax.f32 %v1075_v33, 0.0 }
 0x3e0   : > { %v1295_v6 = vpop.f32.mrf.mxu2  ;;  %v1537_v59 = vpop.f32.mrf.mxu3 }
 0x3e1   : > { %v1296_v1 = vadd.f32 %v2652_v23, %v1295_v6  ;;  %v1538_v45 = vadd.f32 %v2713_v12, %v1537_v59  ;;  %v1086_v6 = vpop.f32.mrf.mxu1  ;;  %v1078_v59 = vadd.f32 %v2566_v57, %v1077_v27 }
 0x3e3   : > { %v1439_v22 = vmax.f32 %v1296_v1, 0.0  ;;  %1715 = vst [vmem:[%s2719_s27 + $0x38] sm:$0xff] %v1538_v45 }
 0x3e5   : > { %1345 = vmatmul.f32.gmra.mxu2 %v1163_v3  ;;  %1587 = vmatmul.f32.gmra.mxu3 %v1439_v22  ;;  %v1171_v22 = vmax.f32 %v1078_v59, 0.0 }
 0x3e8   : > { %v1298_v39 = vpop.f32.mrf.mxu2  ;;  %v1540_v35 = vpop.f32.mrf.mxu3 }
 0x3e9   : > { %v1299_v54 = vadd.f32 %v2652_v23, %v1298_v39  ;;  %v1541_v9 = vadd.f32 %v2713_v12, %v1540_v35  ;;  %v1081_v39 = vadd.f32 %v2566_v57, %v1080_v31  ;;  %v1089_v35 = vpop.f32.mrf.mxu1 }
 0x3eb   : > { %v1440_v48 = vmax.f32 %v1299_v54, 0.0  ;;  %1716 = vst [vmem:[%s2719_s27 + $0x40] sm:$0xff] %v1541_v9 }
 0x3ed   : > { %1348 = vmatmul.f32.gmra.mxu2 %v1164_v10  ;;  %1590 = vmatmul.f32.gmra.mxu3 %v1440_v48  ;;  %v1172_v48 = vmax.f32 %v1081_v39, 0.0 }
 0x3f0   : > { %v1301_v0 = vpop.f32.mrf.mxu2  ;;  %v1543_v16 = vpop.f32.mrf.mxu3 }
 0x3f1   : > { %v1302_v18 = vadd.f32 %v2652_v23, %v1301_v0  ;;  %v1544_v41 = vadd.f32 %v2713_v12, %v1543_v16  ;;  %v1084_v0 = vadd.f32 %v2566_v57, %v1083_v28 }
 0x3f3   : > { %v1441_v7 = vmax.f32 %v1302_v18, 0.0  ;;  %1717 = vst [vmem:[%s2719_s27 + $0x48] sm:$0xff] %v1544_v41  ;;  %v1092_v41 = vpop.f32.mrf.mxu1  ;;  %v1173_v46 = vmax.f32 %v1084_v0, 0.0 }
 0x3f5   : > { %1351 = vmatmul.f32.gmra.mxu2 %v1165_v19  ;;  %1593 = vmatmul.f32.gmra.mxu3 %v1441_v7 }
 0x3f8   : > { %v1304_v58 = vpop.f32.mrf.mxu2  ;;  %v1546_v51 = vpop.f32.mrf.mxu3 }
 0x3f9   : > { %v1305_v24 = vadd.f32 %v2652_v23, %v1304_v58  ;;  %v1547_v17 = vadd.f32 %v2713_v12, %v1546_v51  ;;  %v1087_v58 = vadd.f32 %v2566_v57, %v1086_v6 }
 0x3fb   : > { %v1442_v63 = vmax.f32 %v1305_v24, 0.0  ;;  %1718 = vst [vmem:[%s2719_s27 + $0x50] sm:$0xff] %v1547_v17  ;;  %v1095_v5 = vpop.f32.mrf.mxu1 }
 0x3fd   : > { %1354 = vmatmul.f32.gmra.mxu2 %v1166_v56  ;;  %1596 = vmatmul.f32.gmra.mxu3 %v1442_v63  ;;  %v1174_v63 = vmax.f32 %v1087_v58, 0.0 }
 0x400   : > { %v1307_v15 = vpop.f32.mrf.mxu2  ;;  %v1549_v25 = vpop.f32.mrf.mxu3 }
 0x401   : > { %v1308_v61 = vadd.f32 %v2652_v23, %v1307_v15  ;;  %v1550_v29 = vadd.f32 %v2713_v12, %v1549_v25  ;;  %v1090_v15 = vadd.f32 %v2566_v57, %v1089_v35 }
 0x403   : > { %v1443_v14 = vmax.f32 %v1308_v61, 0.0  ;;  %1719 = vst [vmem:[%s2719_s27 + $0x58] sm:$0xff] %v1550_v29 }
 0x405   : > { %1357 = vmatmul.f32.gmra.mxu2 %v1167_v2  ;;  %1599 = vmatmul.f32.gmra.mxu3 %v1443_v14  ;;  %v1175_v14 = vmax.f32 %v1090_v15, 0.0 }
 0x408   : > { %v1310_v8 = vpop.f32.mrf.mxu2  ;;  %v1552_v30 = vpop.f32.mrf.mxu3 }
 0x409   : > { %v1311_v13 = vadd.f32 %v2652_v23, %v1310_v8  ;;  %v1553_v20 = vadd.f32 %v2713_v12, %v1552_v30  ;;  %v1098_v8 = vpop.f32.mrf.mxu1  ;;  %v1093_v30 = vadd.f32 %v2566_v57, %v1092_v41 }
 0x40b   : > { %v1444_v21 = vmax.f32 %v1311_v13, 0.0  ;;  %1720 = vst [vmem:[%s2719_s27 + $0x60] sm:$0xff] %v1553_v20 }
 0x40d   : > { %1360 = vmatmul.f32.gmra.mxu2 %v1168_v44  ;;  %1602 = vmatmul.f32.gmra.mxu3 %v1444_v21  ;;  %v1176_v21 = vmax.f32 %v1093_v30, 0.0 }
 0x410   : > { %v1313_v40 = vpop.f32.mrf.mxu2  ;;  %v1555_v43 = vpop.f32.mrf.mxu3 }
 0x411   : > { %v1314_v26 = vadd.f32 %v2652_v23, %v1313_v40  ;;  %v1556_v52 = vadd.f32 %v2713_v12, %v1555_v43  ;;  %v1096_v40 = vadd.f32 %v2566_v57, %v1095_v5  ;;  %v1101_v43 = vpop.f32.mrf.mxu1 }
 0x413   : > { %v1445_v47 = vmax.f32 %v1314_v26, 0.0  ;;  %1721 = vst [vmem:[%s2719_s27 + $0x68] sm:$0xff] %v1556_v52 }
 0x415   : > { %1363 = vmatmul.f32.gmra.mxu2 %v1169_v42  ;;  %1605 = vmatmul.f32.gmra.mxu3 %v1445_v47  ;;  %v1177_v47 = vmax.f32 %v1096_v40, 0.0 }
 0x418   : > { %v1316_v60 = vpop.f32.mrf.mxu2  ;;  %v1558_v53 = vpop.f32.mrf.mxu3 }
 0x419   : > { %v1317_v49 = vadd.f32 %v2652_v23, %v1316_v60  ;;  %v1559_v50 = vadd.f32 %v2713_v12, %v1558_v53  ;;  %v1099_v60 = vadd.f32 %v2566_v57, %v1098_v8 }
 0x41b   : > { %v1446_v32 = vmax.f32 %v1317_v49, 0.0  ;;  %1722 = vst [vmem:[%s2719_s27 + $0x70] sm:$0xff] %v1559_v50  ;;  %v1104_v50 = vpop.f32.mrf.mxu1  ;;  %v1178_v6 = vmax.f32 %v1099_v60, 0.0 }
 0x41d   : > { %1366 = vmatmul.f32.gmra.mxu2 %v1170_v36  ;;  %1608 = vmatmul.f32.gmra.mxu3 %v1446_v32 }
 0x420   : > { %v1319_v62 = vpop.f32.mrf.mxu2  ;;  %v1561_v1 = vpop.f32.mrf.mxu3 }
 0x421   : > { %v1320_v45 = vadd.f32 %v2652_v23, %v1319_v62  ;;  %v1562_v3 = vadd.f32 %v2713_v12, %v1561_v1  ;;  %v1102_v62 = vadd.f32 %v2566_v57, %v1101_v43 }
 0x423   : > { %v1447_v4 = vmax.f32 %v1320_v45, 0.0  ;;  %1723 = vst [vmem:[%s2719_s27 + $0x78] sm:$0xff] %v1562_v3  ;;  %v1107_v39 = vpop.f32.mrf.mxu1 }
 0x425   : > { %1369 = vmatmul.f32.gmra.mxu2 %v1171_v22  ;;  %1611 = vmatmul.f32.gmra.mxu3 %v1447_v4  ;;  %v1179_v4 = vmax.f32 %v1102_v62, 0.0 }
 0x428   : > { %v1322_v54 = vpop.f32.mrf.mxu2  ;;  %v1564_v9 = vpop.f32.mrf.mxu3 }
 0x429   : > { %v1323_v10 = vadd.f32 %v2652_v23, %v1322_v54  ;;  %v1565_v11 = vadd.f32 %v2713_v12, %v1564_v9  ;;  %v1105_v54 = vadd.f32 %v2566_v57, %v1104_v50 }
 0x42b   : > { %v1448_v37 = vmax.f32 %v1323_v10, 0.0  ;;  %1724 = vst [vmem:[%s2719_s27 + $0x80] sm:$0xff] %v1565_v11 }
 0x42d   : > { %1372 = vmatmul.f32.gmra.mxu2 %v1172_v48  ;;  %1614 = vmatmul.f32.gmra.mxu3 %v1448_v37  ;;  %v1180_v37 = vmax.f32 %v1105_v54, 0.0 }
 0x430   : > { %v1325_v16 = vpop.f32.mrf.mxu2  ;;  %v1567_v18 = vpop.f32.mrf.mxu3 }
 0x431   : > { %v1326_v19 = vadd.f32 %v2652_v23, %v1325_v16  ;;  %v1568_v7 = vadd.f32 %v2713_v12, %v1567_v18  ;;  %v1110_v16 = vpop.f32.mrf.mxu1  ;;  %v1108_v18 = vadd.f32 %v2566_v57, %v1107_v39 }
 0x433   : > { %v1449_v55 = vmax.f32 %v1326_v19, 0.0  ;;  %1725 = vst [vmem:[%s2719_s27 + $0x88] sm:$0xff] %v1568_v7 }
 0x435   : > { %1375 = vmatmul.f32.gmra.mxu2 %v1173_v46  ;;  %1617 = vmatmul.f32.gmra.mxu3 %v1449_v55  ;;  %v1181_v55 = vmax.f32 %v1108_v18, 0.0 }
 0x438   : > { %v1328_v51 = vpop.f32.mrf.mxu2  ;;  %v1570_v24 = vpop.f32.mrf.mxu3 }
 0x439   : > { %v1329_v17 = vadd.f32 %v2652_v23, %v1328_v51  ;;  %v1571_v56 = vadd.f32 %v2713_v12, %v1570_v24  ;;  %v1111_v51 = vadd.f32 %v2566_v57, %v1110_v16  ;;  %v1113_v24 = vpop.f32.mrf.mxu1 }
 0x43b   : > { %v1450_v27 = vmax.f32 %v1329_v17, 0.0  ;;  %1726 = vst [vmem:[%s2719_s27 + $0x90] sm:$0xff] %v1571_v56 }
 0x43d   : > { %1378 = vmatmul.f32.gmra.mxu2 %v1174_v63  ;;  %1620 = vmatmul.f32.gmra.mxu3 %v1450_v27  ;;  %v1182_v27 = vmax.f32 %v1111_v51, 0.0 }
 0x440   : > { %v1331_v25 = vpop.f32.mrf.mxu2  ;;  %v1573_v61 = vpop.f32.mrf.mxu3 }
 0x441   : > { %v1332_v29 = vadd.f32 %v2652_v23, %v1331_v25  ;;  %v1574_v2 = vadd.f32 %v2713_v12, %v1573_v61  ;;  %v1114_v25 = vadd.f32 %v2566_v57, %v1113_v24 }
 0x443   : > { %v1451_v38 = vmax.f32 %v1332_v29, 0.0  ;;  %1727 = vst [vmem:[%s2719_s27 + $0x98] sm:$0xff] %v1574_v2  ;;  %v1183_v8 = vmax.f32 %v1114_v25, 0.0 }
 0x445   : > { %1381 = vmatmul.f32.gmra.mxu2 %v1175_v14  ;;  %1623 = vmatmul.f32.gmra.mxu3 %v1451_v38  ;;  %v1116_v38 = vpop.f32.mrf.mxu1 }
 0x448   : > { %v1334_v31 = vpop.f32.mrf.mxu2  ;;  %v1576_v13 = vpop.f32.mrf.mxu3 }
 0x449   : > { %v1335_v20 = vadd.f32 %v2652_v23, %v1334_v31  ;;  %v1577_v44 = vadd.f32 %v2713_v12, %v1576_v13  ;;  %v1998_v31 = vld [vmem:[%s2995_s4] ss:$0 sm:$0xff] }
 0x44a   : > { %v1117_v13 = vadd.f32 %v1998_v31, %v1116_v38 }
 0x44b   : > { %v1452_v34 = vmax.f32 %v1335_v20, 0.0  ;;  %1728 = vst [vmem:[%s2719_s27 + $0xa0] sm:$0xff] %v1577_v44 }
 0x44d   : > { %1384 = vmatmul.f32.gmra.mxu2 %v1176_v21  ;;  %1626 = vmatmul.f32.gmra.mxu3 %v1452_v34  ;;  %v1184_v34 = vmax.f32 %v1117_v13, 0.0  ;;  %v1119_v43 = vpop.f32.mrf.mxu1  ;;  %v1999_v13 = vld [vmem:[%s2997_s6] ss:$0 sm:$0xff] }
 0x450   : > { %v1337_v26 = vpop.f32.mrf.mxu2  ;;  %v1579_v52 = vpop.f32.mrf.mxu3 }
 0x451   : > { %v1338_v42 = vadd.f32 %v2652_v23, %v1337_v26  ;;  %v1580_v28 = vadd.f32 %v2713_v12, %v1579_v52  ;;  %v1120_v26 = vadd.f32 %v1998_v31, %v1119_v43 }
 0x453   : > { %v1453_v33 = vmax.f32 %v1338_v42, 0.0  ;;  %1729 = vst [vmem:[%s2719_s27 + $0xa8] sm:$0xff] %v1580_v28 }
 0x455   : > { %1387 = vmatmul.f32.gmra.mxu2 %v1177_v47  ;;  %1629 = vmatmul.f32.gmra.mxu3 %v1453_v33  ;;  %v1185_v33 = vmax.f32 %v1120_v26, 0.0 }
 0x458   : > { %v1340_v53 = vpop.f32.mrf.mxu2  ;;  %v1582_v49 = vpop.f32.mrf.mxu3 }
 0x459   : > { %v1341_v36 = vadd.f32 %v2652_v23, %v1340_v53  ;;  %v1583_v32 = vadd.f32 %v2713_v12, %v1582_v49 }
 0x45b   : > { %v1454_v59 = vmax.f32 %v1341_v36, 0.0  ;;  %1730 = vst [vmem:[%s2719_s27 + $0xb0] sm:$0xff] %v1583_v32 }
 0x45d   : > { %1390 = vmatmul.f32.gmra.mxu2 %v1178_v6  ;;  %1632 = vmatmul.f32.gmra.mxu3 %v1454_v59 }
 0x460   : > { %v1343_v1 = vpop.f32.mrf.mxu2  ;;  %v1585_v45 = vpop.f32.mrf.mxu3 }
 0x461   : > { %v1344_v3 = vadd.f32 %v2652_v23, %v1343_v1  ;;  %v1586_v22 = vadd.f32 %v2713_v12, %v1585_v45 }
 0x463   : > { %v1455_v35 = vmax.f32 %v1344_v3, 0.0  ;;  %1731 = vst [vmem:[%s2719_s27 + $0xb8] sm:$0xff] %v1586_v22 }
 0x465   : > { %1393 = vmatmul.f32.gmra.mxu2 %v1179_v4  ;;  %1635 = vmatmul.f32.gmra.mxu3 %v1455_v35 }
 0x468   : > { %v1346_v9 = vpop.f32.mrf.mxu2  ;;  %v1588_v10 = vpop.f32.mrf.mxu3 }
 0x469   : > { %v1347_v11 = vadd.f32 %v2652_v23, %v1346_v9  ;;  %v1589_v48 = vadd.f32 %v2713_v12, %v1588_v10 }
 0x46b   : > { %v1456_v0 = vmax.f32 %v1347_v11, 0.0  ;;  %1732 = vst [vmem:[%s2719_s27 + $0xc0] sm:$0xff] %v1589_v48 }
 0x46d   : > { %1396 = vmatmul.f32.gmra.mxu2 %v1180_v37  ;;  %1638 = vmatmul.f32.gmra.mxu3 %v1456_v0 }
 0x470   : > { %v1349_v41 = vpop.f32.mrf.mxu2  ;;  %v1591_v19 = vpop.f32.mrf.mxu3 }
 0x471   : > { %v1350_v7 = vadd.f32 %v2652_v23, %v1349_v41  ;;  %v1592_v46 = vadd.f32 %v2713_v12, %v1591_v19 }
 0x473   : > { %v1457_v58 = vmax.f32 %v1350_v7, 0.0  ;;  %1733 = vst [vmem:[%s2719_s27 + $0xc8] sm:$0xff] %v1592_v46 }
 0x475   : > { %1399 = vmatmul.f32.gmra.mxu2 %v1181_v55  ;;  %1641 = vmatmul.f32.gmra.mxu3 %v1457_v58 }
 0x478   : > { %v1352_v17 = vpop.f32.mrf.mxu2  ;;  %v1594_v56 = vpop.f32.mrf.mxu3 }
 0x479   : > { %v1353_v63 = vadd.f32 %v2652_v23, %v1352_v17  ;;  %v1595_v5 = vadd.f32 %v2713_v12, %v1594_v56 }
 0x47b   : > { %v1458_v15 = vmax.f32 %v1353_v63, 0.0  ;;  %1734 = vst [vmem:[%s2719_s27 + $0xd0] sm:$0xff] %v1595_v5 }
 0x47d   : > { %1402 = vmatmul.f32.gmra.mxu2 %v1182_v27  ;;  %1644 = vmatmul.f32.gmra.mxu3 %v1458_v15 }
 0x480   : > { %v1355_v61 = vpop.f32.mrf.mxu2  ;;  %v1597_v29 = vpop.f32.mrf.mxu3 }
 0x481   : > { %v1356_v2 = vadd.f32 %v2652_v23, %v1355_v61  ;;  %v1598_v14 = vadd.f32 %v2713_v12, %v1597_v29 }
 0x483   : > { %v1459_v30 = vmax.f32 %v1356_v2, 0.0  ;;  %1735 = vst [vmem:[%s2719_s27 + $0xd8] sm:$0xff] %v1598_v14 }
 0x485   : > { %1405 = vmatmul.f32.gmra.mxu2 %v1183_v8  ;;  %1647 = vmatmul.f32.gmra.mxu3 %v1459_v30 }
 0x488   : > { %v1358_v20 = vpop.f32.mrf.mxu2  ;;  %v1600_v57 = vpop.f32.mrf.mxu3 }
 0x489   : > { %v1359_v44 = vadd.f32 %v2652_v23, %v1358_v20  ;;  %v1601_v21 = vadd.f32 %v2713_v12, %v1600_v57 }
 0x48b   : > { %v1460_v40 = vmax.f32 %v1359_v44, 0.0  ;;  %1736 = vst [vmem:[%s2719_s27 + $0xe0] sm:$0xff] %v1601_v21 }
 0x48d   : > { %1408 = vmatmul.f32.gmra.mxu2 %v1184_v34  ;;  %1650 = vmatmul.f32.gmra.mxu3 %v1460_v40 }
 0x490   : > { %v1361_v52 = vpop.f32.mrf.mxu2  ;;  %v1603_v42 = vpop.f32.mrf.mxu3 }
 0x491   : > { %v1362_v28 = vadd.f32 %v2652_v23, %v1361_v52  ;;  %v1604_v47 = vadd.f32 %v2713_v12, %v1603_v42 }
 0x493   : > { %v1461_v60 = vmax.f32 %v1362_v28, 0.0  ;;  %1737 = vst [vmem:[%s2719_s27 + $0xe8] sm:$0xff] %v1604_v47 }
 0x495   : > { %1411 = vmatmul.f32.gmra.mxu2 %v1185_v33  ;;  %1653 = vmatmul.f32.gmra.mxu3 %v1461_v60 }
 0x498   : > { %v1364_v53 = vpop.f32.mrf.mxu2  ;;  %v1606_v49 = vpop.f32.mrf.mxu3 }
 0x499   : > { %v1365_v50 = vadd.f32 %v2652_v23, %v1364_v53  ;;  %v1607_v36 = vadd.f32 %v2713_v12, %v1606_v49 }
 0x49b   : > { %v1462_v32 = vmax.f32 %v1365_v50, 0.0  ;;  %1738 = vst [vmem:[%s2719_s27 + $0xf0] sm:$0xff] %v1607_v36 }
 0x49d   : > { %1656 = vmatmul.f32.gmra.mxu3 %v1462_v32 }
 0x4a0   : > { %v1367_v6 = vpop.f32.mrf.mxu2  ;;  %v1609_v59 = vpop.f32.mrf.mxu3 }
 0x4a1   : > { %v1368_v62 = vadd.f32 %v2652_v23, %v1367_v6  ;;  %v1610_v1 = vadd.f32 %v2713_v12, %v1609_v59 }
 0x4a3   : > { %v1463_v45 = vmax.f32 %v1368_v62, 0.0  ;;  %1739 = vst [vmem:[%s2719_s27 + $0xf8] sm:$0xff] %v1610_v1 }
 0x4a5   : > { %1659 = vmatmul.f32.gmra.mxu3 %v1463_v45 }
 0x4a8   : > { %v1370_v3 = vpop.f32.mrf.mxu2  ;;  %v1612_v22 = vpop.f32.mrf.mxu3 }
 0x4a9   : > { %v1371_v4 = vadd.f32 %v2652_v23, %v1370_v3  ;;  %v1613_v39 = vadd.f32 %v2713_v12, %v1612_v22 }
 0x4ab   : > { %v1464_v35 = vmax.f32 %v1371_v4, 0.0  ;;  %1740 = vst [vmem:[%s2719_s27 + $0x100] sm:$0xff] %v1613_v39 }
 0x4ad   : > { %1662 = vmatmul.f32.gmra.mxu3 %v1464_v35 }
 0x4b0   : > { %v1373_v54 = vpop.f32.mrf.mxu2  ;;  %v1615_v9 = vpop.f32.mrf.mxu3 }
 0x4b1   : > { %v1374_v10 = vadd.f32 %v2652_v23, %v1373_v54  ;;  %v1616_v11 = vadd.f32 %v2713_v12, %v1615_v9 }
 0x4b3   : > { %v1465_v48 = vmax.f32 %v1374_v10, 0.0  ;;  %1741 = vst [vmem:[%s2719_s27 + $0x108] sm:$0xff] %v1616_v11 }
 0x4b5   : > { %1665 = vmatmul.f32.gmra.mxu3 %v1465_v48 }
 0x4b8   : > { %v1376_v37 = vpop.f32.mrf.mxu2  ;;  %v1618_v0 = vpop.f32.mrf.mxu3 }
 0x4b9   : > { %v1377_v16 = vadd.f32 %v2652_v23, %v1376_v37  ;;  %v1619_v18 = vadd.f32 %v2713_v12, %v1618_v0 }
 0x4bb   : > { %v1466_v41 = vmax.f32 %v1377_v16, 0.0  ;;  %1742 = vst [vmem:[%s2719_s27 + $0x110] sm:$0xff] %v1619_v18 }
 0x4bd   : > { %1668 = vmatmul.f32.gmra.mxu3 %v1466_v41 }
 0x4c0   : > { %v1379_v19 = vpop.f32.mrf.mxu2  ;;  %v1621_v7 = vpop.f32.mrf.mxu3 }
 0x4c1   : > { %v1380_v46 = vadd.f32 %v2652_v23, %v1379_v19  ;;  %v1622_v55 = vadd.f32 %v2713_v12, %v1621_v7 }
 0x4c3   : > { %v1467_v58 = vmax.f32 %v1380_v46, 0.0  ;;  %1743 = vst [vmem:[%s2719_s27 + $0x118] sm:$0xff] %v1622_v55 }
 0x4c5   : > { %1671 = vmatmul.f32.gmra.mxu3 %v1467_v58 }
 0x4c8   : > { %v1382_v51 = vpop.f32.mrf.mxu2  ;;  %v1624_v24 = vpop.f32.mrf.mxu3 }
 0x4c9   : > { %v1383_v17 = vadd.f32 %v2652_v23, %v1382_v51  ;;  %v1625_v56 = vadd.f32 %v2713_v12, %v1624_v24 }
 0x4cb   : > { %v1468_v63 = vmax.f32 %v1383_v17, 0.0  ;;  %1744 = vst [vmem:[%s2719_s27 + $0x120] sm:$0xff] %v1625_v56 }
 0x4cd   : > { %1674 = vmatmul.f32.gmra.mxu3 %v1468_v63 }
 0x4d0   : > { %v1385_v5 = vpop.f32.mrf.mxu2  ;;  %v1627_v27 = vpop.f32.mrf.mxu3 }
 0x4d1   : > { %v1386_v15 = vadd.f32 %v2652_v23, %v1385_v5  ;;  %v1628_v25 = vadd.f32 %v2713_v12, %v1627_v27 }
 0x4d3   : > { %v1469_v61 = vmax.f32 %v1386_v15, 0.0  ;;  %1745 = vst [vmem:[%s2719_s27 + $0x128] sm:$0xff] %v1628_v25 }
 0x4d5   : > { %1677 = vmatmul.f32.gmra.mxu3 %v1469_v61 }
 0x4d8   : > { %v1388_v29 = vpop.f32.mrf.mxu2  ;;  %v1630_v2 = vpop.f32.mrf.mxu3 }
 0x4d9   : > { %v1389_v14 = vadd.f32 %v2652_v23, %v1388_v29  ;;  %v1631_v38 = vadd.f32 %v2713_v12, %v1630_v2 }
 0x4db   : > { %v1470_v8 = vmax.f32 %v1389_v14, 0.0  ;;  %1746 = vst [vmem:[%s2719_s27 + $0x130] sm:$0xff] %v1631_v38 }
 0x4dd   : > { %1680 = vmatmul.f32.gmra.mxu3 %v1470_v8 }
 0x4e0   : > { %v1391_v30 = vpop.f32.mrf.mxu2  ;;  %v1633_v31 = vpop.f32.mrf.mxu3 }
 0x4e1   : > { %v1392_v20 = vadd.f32 %v1999_v13, %v1391_v30  ;;  %v1634_v57 = vadd.f32 %v2713_v12, %v1633_v31 }
 0x4e3   : > { %v1471_v44 = vmax.f32 %v1392_v20, 0.0  ;;  %1747 = vst [vmem:[%s2719_s27 + $0x138] sm:$0xff] %v1634_v57 }
 0x4e5   : > { %1683 = vmatmul.f32.gmra.mxu3 %v1471_v44 }
 0x4e8   : > { %v1394_v23 = vpop.f32.mrf.mxu2  ;;  %v1636_v21 = vpop.f32.mrf.mxu3 }
 0x4e9   : > { %v1395_v34 = vadd.f32 %v1999_v13, %v1394_v23  ;;  %v1637_v40 = vadd.f32 %v2713_v12, %v1636_v21 }
 0x4eb   : > { %v1472_v43 = vmax.f32 %v1395_v34, 0.0  ;;  %1748 = vst [vmem:[%s2719_s27 + $0x140] sm:$0xff] %v1637_v40 }
 0x4ed   : > { %1686 = vmatmul.f32.gmra.mxu3 %v1472_v43 }
 0x4f0   : > { %v1397_v26 = vpop.f32.mrf.mxu2  ;;  %v1639_v52 = vpop.f32.mrf.mxu3 }
 0x4f1   : > { %v1398_v42 = vadd.f32 %v1999_v13, %v1397_v26  ;;  %v1640_v28 = vadd.f32 %v2713_v12, %v1639_v52 }
 0x4f3   : > { %v1473_v47 = vmax.f32 %v1398_v42, 0.0  ;;  %1749 = vst [vmem:[%s2719_s27 + $0x148] sm:$0xff] %v1640_v28 }
 0x4f5   : > { %1689 = vmatmul.f32.gmra.mxu3 %v1473_v47 }
 0x4f8   : > { %v1400_v33 = vpop.f32.mrf.mxu2  ;;  %v1642_v60 = vpop.f32.mrf.mxu3 }
 0x4f9   : > { %v1401_v53 = vadd.f32 %v1999_v13, %v1400_v33  ;;  %v1643_v49 = vadd.f32 %v2713_v12, %v1642_v60 }
 0x4fb   : > { %v1474_v50 = vmax.f32 %v1401_v53, 0.0  ;;  %1750 = vst [vmem:[%s2719_s27 + $0x150] sm:$0xff] %v1643_v49 }
 0x4fd   : > { %1692 = vmatmul.f32.gmra.mxu3 %v1474_v50 }
 0x500   : > { %v1403_v36 = vpop.f32.mrf.mxu2  ;;  %v1645_v32 = vpop.f32.mrf.mxu3 }
 0x501   : > { %v1404_v6 = vadd.f32 %v1999_v13, %v1403_v36  ;;  %v1646_v59 = vadd.f32 %v2713_v12, %v1645_v32 }
 0x503   : > { %v1475_v62 = vmax.f32 %v1404_v6, 0.0  ;;  %1751 = vst [vmem:[%s2719_s27 + $0x158] sm:$0xff] %v1646_v59 }
 0x505   : > { %1695 = vmatmul.f32.gmra.mxu3 %v1475_v62 }
 0x508   : > { %v1406_v1 = vpop.f32.mrf.mxu2  ;;  %v1648_v45 = vpop.f32.mrf.mxu3 }
 0x509   : > { %v1407_v3 = vadd.f32 %v1999_v13, %v1406_v1  ;;  %v1649_v22 = vadd.f32 %v2713_v12, %v1648_v45 }
 0x50b   : > { %v1476_v4 = vmax.f32 %v1407_v3, 0.0  ;;  %1752 = vst [vmem:[%s2719_s27 + $0x160] sm:$0xff] %v1649_v22 }
 0x50d   : > { %1698 = vmatmul.f32.gmra.mxu3 %v1476_v4 }
 0x510   : > { %v1409_v39 = vpop.f32.mrf.mxu2  ;;  %v1651_v35 = vpop.f32.mrf.mxu3 }
 0x511   : > { %v1410_v54 = vadd.f32 %v1999_v13, %v1409_v39  ;;  %v1652_v9 = vadd.f32 %v2713_v12, %v1651_v35 }
 0x513   : > { %v1477_v10 = vmax.f32 %v1410_v54, 0.0  ;;  %1753 = vst [vmem:[%s2719_s27 + $0x168] sm:$0xff] %v1652_v9 }
 0x515   : > { %1701 = vmatmul.f32.gmra.mxu3 %v1477_v10 }
 0x518   : > { %v1412_v11 = vpop.f32.mrf.mxu2  ;;  %v1654_v48 = vpop.f32.mrf.mxu3 }
 0x519   : > { %v1413_v37 = vadd.f32 %v1999_v13, %v1412_v11  ;;  %v1655_v0 = vadd.f32 %v2713_v12, %v1654_v48 }
 0x51b   : > { %v1478_v16 = vmax.f32 %v1413_v37, 0.0  ;;  %1754 = vst [vmem:[%s2719_s27 + $0x170] sm:$0xff] %v1655_v0 }
 0x51d   : > { %1704 = vmatmul.f32.gmra.mxu3 %v1478_v16 }
 0x520   : > { %v1657_v18 = vpop.f32.mrf.mxu3 }
 0x521   : > { %v1658_v41 = vadd.f32 %v2713_v12, %v1657_v18 }
 0x523   : > { %1755 = vst [vmem:[%s2719_s27 + $0x178] sm:$0xff] %v1658_v41 }
 0x528   : > { %v1660_v19 = vpop.f32.mrf.mxu3 }
 0x529   : > { %v1661_v7 = vadd.f32 %v2713_v12, %v1660_v19 }
 0x52b   : > { %1756 = vst [vmem:[%s2719_s27 + $0x180] sm:$0xff] %v1661_v7 }
 0x530   : > { %v1663_v46 = vpop.f32.mrf.mxu3 }
 0x531   : > { %v1664_v55 = vadd.f32 %v2713_v12, %v1663_v46 }
 0x533   : > { %1757 = vst [vmem:[%s2719_s27 + $0x188] sm:$0xff] %v1664_v55 }
 0x538   : > { %v1666_v58 = vpop.f32.mrf.mxu3 }
 0x539   : > { %v1667_v51 = vadd.f32 %v2713_v12, %v1666_v58 }
 0x53b   : > { %1758 = vst [vmem:[%s2719_s27 + $0x190] sm:$0xff] %v1667_v51 }
 0x540   : > { %v1669_v24 = vpop.f32.mrf.mxu3 }
 0x541   : > { %v1670_v17 = vadd.f32 %v2713_v12, %v1669_v24 }
 0x543   : > { %1759 = vst [vmem:[%s2719_s27 + $0x198] sm:$0xff] %v1670_v17 }
 0x548   : > { %v1672_v56 = vpop.f32.mrf.mxu3 }
 0x549   : > { %v1673_v63 = vadd.f32 %v2713_v12, %v1672_v56 }
 0x54b   : > { %1760 = vst [vmem:[%s2719_s27 + $0x1a0] sm:$0xff] %v1673_v63 }
 0x550   : > { %v1675_v5 = vpop.f32.mrf.mxu3 }
 0x551   : > { %v1676_v27 = vadd.f32 %v2713_v12, %v1675_v5 }
 0x553   : > { %1761 = vst [vmem:[%s2719_s27 + $0x1a8] sm:$0xff] %v1676_v27 }
 0x558   : > { %v1678_v15 = vpop.f32.mrf.mxu3 }
 0x559   : > { %v1679_v25 = vadd.f32 %v2713_v12, %v1678_v15 }
 0x55b   : > { %1762 = vst [vmem:[%s2719_s27 + $0x1b0] sm:$0xff] %v1679_v25 }
 0x560   : > { %v1681_v61 = vpop.f32.mrf.mxu3 }
 0x561   : > { %v1682_v29 = vadd.f32 %v2713_v12, %v1681_v61 }
 0x563   : > { %1763 = vst [vmem:[%s2719_s27 + $0x1b8] sm:$0xff] %v1682_v29 }
 0x568   : > { %v1684_v2 = vpop.f32.mrf.mxu3 }
 0x569   : > { %v1685_v14 = vadd.f32 %v2713_v12, %v1684_v2 }
 0x56b   : > { %1764 = vst [vmem:[%s2719_s27 + $0x1c0] sm:$0xff] %v1685_v14 }
 0x570   : > { %v1687_v38 = vpop.f32.mrf.mxu3 }
 0x571   : > { %v1688_v8 = vadd.f32 %v2713_v12, %v1687_v38 }
 0x573   : > { %1765 = vst [vmem:[%s2719_s27 + $0x1c8] sm:$0xff] %v1688_v8 }
 0x578   : > { %v1690_v30 = vpop.f32.mrf.mxu3 }
 0x579   : > { %v1691_v31 = vadd.f32 %v2713_v12, %v1690_v30 }
 0x57b   : > { %1766 = vst [vmem:[%s2719_s27 + $0x1d0] sm:$0xff] %v1691_v31 }
 0x580   : > { %v1693_v13 = vpop.f32.mrf.mxu3 }
 0x581   : > { %v1694_v20 = vadd.f32 %v2713_v12, %v1693_v13 }
 0x583   : > { %1767 = vst [vmem:[%s2719_s27 + $0x1d8] sm:$0xff] %v1694_v20 }
 0x588   : > { %v1696_v57 = vpop.f32.mrf.mxu3 }
 0x589   : > { %v1697_v44 = vadd.f32 %v2713_v12, %v1696_v57 }
 0x58b   : > { %1768 = vst [vmem:[%s2719_s27 + $0x1e0] sm:$0xff] %v1697_v44 }
 0x590   : > { %v1699_v23 = vpop.f32.mrf.mxu3 }
 0x591   : > { %v1700_v21 = vadd.f32 %v2713_v12, %v1699_v23 }
 0x593   : > { %1769 = vst [vmem:[%s2719_s27 + $0x1e8] sm:$0xff] %v1700_v21 }
 0x598   : > { %v1702_v34 = vpop.f32.mrf.mxu3 }
 0x599   : > { %v1703_v40 = vadd.f32 %v2713_v12, %v1702_v34 }
 0x59b   : > { %1770 = vst [vmem:[%s2719_s27 + $0x1f0] sm:$0xff] %v1703_v40 }
 0x59f   : > { %1779 = sbr.rel (!%p2166_p5) target bundleno = 1476 (0x5c4), region = 60 }
 0x5a0   : > { %v1705_v43 = vpop.f32.mrf.mxu3 }
 0x5a1   : > { %v1706_v26 = vadd.f32 %v2713_v12, %v1705_v43 }
 0x5a3   : > { %1771 = vst [vmem:[%s2719_s27 + $0x1f8] sm:$0xff] %v1706_v26 }
 0x5a4   : > { %s3015_s21 = smov (!%p1782_p11, %s1781_s21), 64 }
 0x5a5   : > { %s1930_s24 = sshll.u32 %s3015_s21, 3 }
 0x5a6   : > { %s1785_s25 = ssub.s32 512, %s1930_s24 }
 0x5a7   : > { %s1786_s26 = sshll.u32 %s1785_s25, 4 }
 0x5a8   : > { %1787 = vsyncadd %s2930_s14, %s1786_s26  ;;  %p2939_p12 = scmp.ne.s32.totalorder %s1930_s24, 0  ;;  %s1937_s19 = sshll.u32 %s2149_s13, 9 }
 0x5a9   : > { %s1790_s29 = scalar_lea.hbm %s3000_s9, %s1937_s19  ;;  %s1792_s16 = sshll.u32 %s2719_s27, 4  ;;  %s2948_s16 = int_to_ptr.vmem [resolvable:$true] %s1792_s16 }
 0x5aa   : > { %s1794_s17 = sshll.u32 %s1790_s29, 4  ;;  %s3001_s25 = sshll.u32 %s3015_s21, 7  ;;  %s2950_s17 = int_to_ptr.hbm [resolvable:$true] %s1794_s17 }
 0x5ab   : > { %s2000_s26 = sshra.s32 %s2948_s16, 4  ;;  %s2002_s24 = sshrl.u32 %s3001_s25, 4  ;;  %s2001_s26 = int_to_ptr.vmem [resolvable:$true] %s2000_s26 }
 0x5ac   : > { %s2007_s0 = scalar_lea.vmem %s2001_s26, %s2002_s24  ;;  %s2075_s13 = smov [#allocation2]  }
 0x5ad   : > { %p2008_p13 = scmp.ne.s32.totalorder %s2001_s26, %s2007_s0  ;;  %s2011_s28 = scalar_lea.vmem %s2075_s13, 1024 }
 0x5ae   : > { %p2013_p2 = scmp.lt.s32.totalorder %s2011_s28, %s2007_s0 }
 0x5af   : > { %p2009_p0 = pnand %p2008_p13, %p2939_p12 }
 0x5b1   : > { %p2010_p1 = pneg %p2009_p0 }
 0x5b3   : > { %p2015_p3 = pnand %p2013_p2, %p2010_p1 }
 0x5b5   : > { %2018 = shalt.err (!%p2015_p3)
}
 0x5b6   : > { %s2019_s27 = sshra.s32 %s2950_s17, 4  ;;  %s2030_s26 = scalar_lea.hbm %s3000_s9, 1000  ;;  %s2020_s27 = int_to_ptr.hbm [resolvable:$true] %s2019_s27 }
 0x5b7   : > { %s2026_s19 = scalar_lea.hbm %s2020_s27, %s2002_s24  ;;  %p2031_p8 = scmp.lt.s32.totalorder %s2020_s27, %s3000_s9 }
 0x5b8   : > { %p2027_p4 = scmp.ne.s32.totalorder %s2020_s27, %s2026_s19  ;;  %p2032_p9 = scmp.lt.s32.totalorder %s2030_s26, %s2026_s19 }
 0x5ba   : > { %p2028_p5 = pnand %p2027_p4, %p2939_p12  ;;  %p2033_p10 = por %p2032_p9, %p2031_p8 }
 0x5bc   : > { %p2029_p7 = pneg %p2028_p5 }
 0x5be   : > { %p2034_p11 = pnand %p2033_p10, %p2029_p7 }
 0x5c0   : > { %2037 = shalt.err (!%p2034_p11)
}
 0x5c1   : > { %s2076_s0 = smov 128   ;;  %s2077_s24 = smov 8  }
 0x5c2   : > { %s3009_s13 = sshll.u32 %s3015_s21, 7 }
 0x5c3   : > { %1800 = dma.vmem_to_hbm [thread:$0]  (%p2939_p12), %s2948_s16, %s3009_s13, %s2950_s17, %s2930_s14, %s2076_s0, %s2076_s0, %s2077_s24  }
 0x5c4 PF: > { %p1959_p13 = scmp.ge.s32.totalorder %s2073_s12, 2  ;;  %s1809_s1 = sand.u32 1, %s2061_s30  }
 0x5c5   : > { %s1810_s25 = scalar_lea.sflag [#allocation3], %s1809_s1 }
 0x5c6   : > { %p1956_p0 = pnand %p1959_p13, %p2170_p6 }
 0x5c8   : > { %p1957_p1 = pneg %p1956_p0 }
 0x5ca   : > { %2056 = dma.done.wait (%p1957_p1), %s1810_s25, 8192  }
 0x5cb   : > { %2058 = vsyncadd (%p1957_p1), %s1810_s25, 4294959104  ;;  %p19_p2 = scmp.ge.s32.totalorder %s2153_s15, 4   ;;  %s3010_s30 = smov %s2065_s10 }
 0x5cc   : > { %s3011_s10 = smov %s2069_s11  ;;  %s3012_s11 = smov %s2164_s18 }
 0x5cd   : > { %s3013_s12 = smov %s2153_s15  ;;  %21 = sbr.rel (!%p19_p2) target bundleno = 6 (0x6), region = 91 }
 0x5d2   :  { %1816 = vsyncpa [#allocation3], 1 }
 0x5d3   :  { %1818 = vsyncpa [#allocation3 + $0x1], 1 }

</bundles_post_ra>
